<compile_context>
chip_gen: v7x
topology: tpu7x:2x2x1
jax: 0.10.0
libtpu: 0.0.40
codegen_flags: <defaults>
</compile_context>

<pallas_src>
import functools
import math

import jax
import jax.numpy as jnp
from jax import lax
from jax.experimental import pallas as pl
from jax.experimental.pallas import tpu as pltpu

RWKV_K_CLAMP = 60.0
RWKV_K_EPS = 1e-9
LN_EPS = 1e-5  # torch nn.LayerNorm default eps


# ----------------------------- kernel helpers -----------------------------

def _layernorm(v, g, b):
    mu = jnp.mean(v, axis=-1, keepdims=True)
    var = jnp.mean(jnp.square(v - mu), axis=-1, keepdims=True)
    return (v - mu) * lax.rsqrt(var + LN_EPS) * g + b


# ----------------------------- block kernel -------------------------------

def rwkv_block_kernel(x_ref, pvec_ref, txc_ref,
                      wk_ref, wv_ref, wr_ref, wo_ref,
                      wkey_ref, wrec_ref, wval_ref,
                      out_ref,
                      tx_ref, state_ref, att_sh_ref, ffn_sh_ref,
                      *, has_ln0, Tt, Ts, C):
    t_idx = pl.program_id(1)

    # Reset carried state (TimeX state + time-shift carries) at the start of
    # each sequence (t tile 0 of each batch element).
    @pl.when(t_idx == 0)
    def _init():
        state_ref[...] = jnp.zeros_like(state_ref)
        att_sh_ref[...] = jnp.zeros_like(att_sh_ref)
        ffn_sh_ref[...] = jnp.zeros_like(ffn_sh_ref)

    bf = jnp.bfloat16
    pv = pvec_ref[...]                                     # (16, C) f32
    ln0_g, ln0_b = pv[0:1, :], pv[1:2, :]
    ln1_g, ln1_b = pv[2:3, :], pv[3:4, :]
    ln2_g, ln2_b = pv[4:5, :], pv[5:6, :]
    a_tmk, a_tmv, a_tmr = pv[6:7, :], pv[7:8, :], pv[8:9, :]
    f_tmk, f_tmr = pv[9:10, :], pv[10:11, :]

    x = x_ref[0].astype(jnp.float32)                       # (Tt, C)
    if has_ln0:  # only layer 0 has ln0 (static flag)
        x = _layernorm(x, ln0_g, ln0_b)

    row = lax.broadcasted_iota(jnp.int32, (Tt, C), 0)

    # ---------------- RWKV_TimeMix (attention branch) ----------------
    xln = _layernorm(x, ln1_g, ln1_b)
    prev = att_sh_ref[...]                                 # last row of previous tile
    xx = jnp.where(row == 0, prev, pltpu.roll(xln, shift=1, axis=0))
    att_sh_ref[...] = xln[Tt - 1:Tt, :]

    xk = xln * a_tmk + xx * (1.0 - a_tmk)
    xv = xln * a_tmv + xx * (1.0 - a_tmv)
    xr = xln * a_tmr + xx * (1.0 - a_tmr)

    k = jnp.dot(xk.astype(bf), wk_ref[...], preferred_element_type=jnp.float32)
    v = jnp.dot(xv.astype(bf), wv_ref[...], preferred_element_type=jnp.float32)
    r = jnp.dot(xr.astype(bf), wr_ref[...], preferred_element_type=jnp.float32)

    k = jnp.exp(jnp.minimum(k, RWKV_K_CLAMP))

    # Two TimeX streams share one scratch buffer, stacked along sublanes:
    # rows [0, Tt)  : kv  -> becomes wkv
    # rows [Tt, 2Tt): k   -> becomes wk
    tx_ref[0:Tt, :] = k * v
    tx_ref[Tt:2 * Tt, :] = k

    txc = txc_ref[...]                                     # (2*Ts+8, C) f32
    decay_pow = txc[0:Ts, :]                               # exp(-d * i)
    state_coef = txc[Ts:2 * Ts, :]                         # exp(-d * (Ts-1-i))
    sub_decay = txc[2 * Ts:2 * Ts + 1, :]                  # exp(-d * Ts)
    tf_vec = txc[2 * Ts + 1:2 * Ts + 2, :]                 # exp(time_first)
    row_sub = lax.broadcasted_iota(jnp.int32, (Ts, C), 0)

    # TimeX:  out[t] = eps + tf*y[t] + sum_{s>=1} exp(-d*(s-1)) * y[t-s]
    # chunked over Ts-row sub-chunks with carried state S (all exponents <= 0).
    def _timex_stream(base, srow, eps):
        def body(m, carry):
            off = pl.multiple_of(m * Ts + base, Ts)
            y = tx_ref[pl.ds(off, Ts), :]                  # (Ts, C)
            s_in = state_ref[srow:srow + 1, :]             # (1, C)
            acc = eps + tf_vec * y + decay_pow * s_in
            for s in range(1, Ts):                         # short static lag loop
                sh = pltpu.roll(y, shift=s, axis=0)
                sh = jnp.where(row_sub >= s, sh, 0.0)
                acc = acc + decay_pow[s - 1:s, :] * sh
            state_ref[srow:srow + 1, :] = (
                sub_decay * s_in + jnp.sum(state_coef * y, axis=0, keepdims=True))
            tx_ref[pl.ds(off, Ts), :] = acc
            return carry
        lax.fori_loop(0, Tt // Ts, body, 0)

    _timex_stream(0, 0, 0.0)            # wkv stream (eps = 0)
    _timex_stream(Tt, 1, RWKV_K_EPS)    # wk  stream (eps = 1e-9)

    rwkv = jax.nn.sigmoid(r) * (tx_ref[0:Tt, :] / tx_ref[Tt:2 * Tt, :])
    x = x + jnp.dot(rwkv.astype(bf), wo_ref[...], preferred_element_type=jnp.float32)

    # ---------------- RWKV_ChannelMix (ffn branch) ----------------
    xln2 = _layernorm(x, ln2_g, ln2_b)
    prev2 = ffn_sh_ref[...]
    xx2 = jnp.where(row == 0, prev2, pltpu.roll(xln2, shift=1, axis=0))
    ffn_sh_ref[...] = xln2[Tt - 1:Tt, :]

    xk2 = xln2 * f_tmk + xx2 * (1.0 - f_tmk)
    xr2 = xln2 * f_tmr + xx2 * (1.0 - f_tmr)

    kk = jnp.dot(xk2.astype(bf), wkey_ref[...], preferred_element_type=jnp.float32)
    kk = jnp.square(jnp.maximum(kk, 0.0))
    kvv = jnp.dot(kk.astype(bf), wval_ref[...], preferred_element_type=jnp.float32)
    rr = jax.nn.sigmoid(jnp.dot(xr2.astype(bf), wrec_ref[...],
                                preferred_element_type=jnp.float32))
    x = x + rr * kvv

    out_ref[0] = x.astype(out_ref.dtype)


# ----------------------------- head kernel --------------------------------

def head_kernel(x_ref, lnp_ref, wh_ref, out_ref):
    lnp = lnp_ref[...]
    g, b = lnp[0:1, :], lnp[1:2, :]
    xn = _layernorm(x_ref[0].astype(jnp.float32), g, b)
    out_ref[0] = jnp.dot(xn.astype(jnp.bfloat16), wh_ref[...],
                         preferred_element_type=jnp.float32).astype(out_ref.dtype)


# ----------------------------- wrappers ------------------------------------

def _full_spec(a):
    nd = a.ndim
    return pl.BlockSpec(a.shape, lambda b, t, nd=nd: (0,) * nd)


def _pack_pvec(blk, C):
    rows = [blk['ln0_g'], blk['ln0_b'], blk['ln1_g'], blk['ln1_b'],
            blk['ln2_g'], blk['ln2_b'],
            blk['att_tmk'], blk['att_tmv'], blk['att_tmr'],
            blk['ffn_tmk'], blk['ffn_tmr'],
            jnp.zeros((5, C), jnp.float32)]
    return jnp.concatenate(rows, axis=0)                   # (16, C)


def _make_tx_coef(time_decay, time_first, ts, C):
    # w(lag s>=1) = exp(-d*(s-1)), w(lag 0) = exp(time_first), d = exp(time_decay)
    d = jnp.exp(time_decay.astype(jnp.float32))            # (1, C)
    i = jnp.arange(ts, dtype=jnp.float32).reshape(ts, 1)
    decay_pow = jnp.exp(-d * i)                            # (ts, C): lag / cross coef
    state_coef = jnp.exp(-d * (float(ts - 1) - i))         # (ts, C): state update
    sub_decay = jnp.exp(-d * float(ts))                    # (1, C)
    tf = jnp.exp(time_first.astype(jnp.float32))           # (1, C)
    pad = jnp.zeros((6, C), jnp.float32)
    return jnp.concatenate([decay_pow, state_coef, sub_decay, tf, pad], axis=0)


def run_block(x, blk, has_ln0, tt, ts):
    B, T, C = x.shape
    pvec = _pack_pvec(blk, C)
    txc = _make_tx_coef(blk['att_decay'], blk['att_first'], ts, C)
    kern = functools.partial(rwkv_block_kernel, has_ln0=has_ln0, Tt=tt, Ts=ts, C=C)
    args = [pvec, txc,
            blk['att_wk'], blk['att_wv'], blk['att_wr'], blk['att_wo'],
            blk['ffn_wkey'], blk['ffn_wrec'], blk['ffn_wval']]
    return pl.pallas_call(
        kern,
        out_shape=jax.ShapeDtypeStruct((B, T, C), x.dtype),
        grid=(B, T // tt),
        in_specs=[pl.BlockSpec((1, tt, C), lambda b, t: (b, t, 0))]
                 + [_full_spec(a) for a in args],
        out_specs=pl.BlockSpec((1, tt, C), lambda b, t: (b, t, 0)),
        scratch_shapes=[pltpu.VMEM((2 * tt, C), jnp.float32),   # kv/k -> wkv/wk
                        pltpu.VMEM((2, C), jnp.float32),        # TimeX carried state
                        pltpu.VMEM((1, C), jnp.float32),        # att time-shift carry
                        pltpu.VMEM((1, C), jnp.float32)],       # ffn time-shift carry
        compiler_params=pltpu.CompilerParams(
            dimension_semantics=("parallel", "arbitrary"),
            vmem_limit_bytes=64 * 1024 * 1024),
    )(x, *args)


def run_head(x, params, tt):
    B, T, C = x.shape
    head_w = params['head_w']                              # (C, V) bf16
    V = head_w.shape[1]
    if V % 512 == 0:
        tv = 512
    elif V % 128 == 0:
        tv = 128
    else:
        tv = V
    lnp = jnp.concatenate([params['ln_out_g'], params['ln_out_b'],
                           jnp.zeros((6, C), jnp.float32)], axis=0)   # (8, C)
    return pl.pallas_call(
        head_kernel,
        out_shape=jax.ShapeDtypeStruct((B, T, V), jnp.float32),
        grid=(B, T // tt, V // tv),
        in_specs=[pl.BlockSpec((1, tt, C), lambda b, t, j: (b, t, 0)),
                  pl.BlockSpec((8, C), lambda b, t, j: (0, 0)),
                  pl.BlockSpec((C, tv), lambda b, t, j: (0, j))],
        out_specs=pl.BlockSpec((1, tt, tv), lambda b, t, j: (b, t, j)),
        compiler_params=pltpu.CompilerParams(
            dimension_semantics=("parallel", "parallel", "parallel"),
            vmem_limit_bytes=64 * 1024 * 1024),
    )(x, lnp, head_w)


def gpt_forward(idx, params):
    B, T = idx.shape
    tt = 128 if T % 128 == 0 else T          # time tile
    ts = 16 if tt % 16 == 0 else tt          # TimeX sub-chunk (divides tt)
    # Embedding lookup is glue (plain JAX gather); bf16 inter-layer activations.
    x = params['emb'][idx].astype(jnp.bfloat16)            # (B, T, C)
    for l, blk in enumerate(params['blocks']):
        x = run_block(x, blk, has_ln0=(l == 0), tt=tt, ts=ts)
    return run_head(x, params, tt=tt)                      # (B, T, V) f32 logits


# ----------------------------- parameter init ------------------------------

def init_params(key, vocab_size, n_embd, n_layer):
    C = n_embd
    H = 4 * C
    ks = jax.random.split(key, 2 + 7 * n_layer)
    it = iter(ks)

    def lin(k, fan_in, fan_out, std=0.01):
        # torch Linear weight is (out, in); stored pre-transposed (in, out), bf16.
        w = jax.random.normal(k, (fan_in, fan_out), jnp.float32) * std
        return w.astype(jnp.bfloat16)

    emb = jax.random.normal(next(it), (vocab_size, C), jnp.float32) * 1e-5

    half = C // 2
    tmix = jnp.concatenate([jnp.zeros((half,), jnp.float32),
                            jnp.ones((C - half,), jnp.float32)]).reshape(1, C)
    ones = jnp.ones((1, C), jnp.float32)
    zeros = jnp.zeros((1, C), jnp.float32)

    blocks = []
    for _ in range(n_layer):
        blocks.append(dict(
            ln0_g=ones, ln0_b=zeros,
            ln1_g=ones, ln1_b=zeros,
            ln2_g=ones, ln2_b=zeros,
            att_tmk=tmix, att_tmv=tmix, att_tmr=tmix,
            att_decay=jnp.ones((1, C), jnp.float32),                 # time_decay init
            att_first=jnp.full((1, C), math.log(0.3), jnp.float32),  # time_first init
            att_wk=lin(next(it), C, C), att_wv=lin(next(it), C, C),
            att_wr=lin(next(it), C, C), att_wo=lin(next(it), C, C),
            ffn_tmk=tmix, ffn_tmr=tmix,
            ffn_wkey=lin(next(it), C, H),
            ffn_wrec=lin(next(it), C, C),
            ffn_wval=lin(next(it), H, C),
        ))

    head_w = (jax.random.normal(next(it), (C, vocab_size), jnp.float32)
              * 0.01).astype(jnp.bfloat16)
    return dict(emb=emb, blocks=blocks,
                ln_out_g=ones, ln_out_b=zeros, head_w=head_w)


# ----------------------------- main ----------------------------------------

if __name__ == "__main__":
    vocab_size, n_embd, n_layer, ctx_len = 64, 32, 2, 8
    B = 2

    key = jax.random.PRNGKey(0)
    pkey, dkey = jax.random.split(key)
    params = init_params(pkey, vocab_size, n_embd, n_layer)
    idx = jax.random.randint(dkey, (B, ctx_len), 0, vocab_size, dtype=jnp.int32)

    logits = gpt_forward(idx, params)
    logits = jax.block_until_ready(logits)

    assert logits.shape == (B, ctx_len, vocab_size), logits.shape
    assert bool(jnp.all(jnp.isfinite(logits)))
    print("KERNEL_OK")
</pallas_src>

<mosaic_0001>
module attributes {stable_mosaic.version = 11 : i64} {
  func.func @rwkv_block_kernel(%arg0: i32, %arg1: i32, %arg2: memref<1x8x32xbf16, #tpu.memory_space<vmem>>, %arg3: memref<16x32xf32, #tpu.memory_space<vmem>>, %arg4: memref<24x32xf32, #tpu.memory_space<vmem>>, %arg5: memref<32x32xbf16, #tpu.memory_space<vmem>>, %arg6: memref<32x32xbf16, #tpu.memory_space<vmem>>, %arg7: memref<32x32xbf16, #tpu.memory_space<vmem>>, %arg8: memref<32x32xbf16, #tpu.memory_space<vmem>>, %arg9: memref<32x128xbf16, #tpu.memory_space<vmem>>, %arg10: memref<32x32xbf16, #tpu.memory_space<vmem>>, %arg11: memref<128x32xbf16, #tpu.memory_space<vmem>>, %arg12: memref<1x8x32xbf16, #tpu.memory_space<vmem>>, %arg13: memref<16x32xf32, #tpu.memory_space<vmem>>, %arg14: memref<2x32xf32, #tpu.memory_space<vmem>>, %arg15: memref<1x32xf32, #tpu.memory_space<vmem>>, %arg16: memref<1x32xf32, #tpu.memory_space<vmem>>) attributes {dimension_semantics = [#tpu.dimension_semantics<parallel>, #tpu.dimension_semantics<arbitrary>], iteration_bounds = array<i64: 2, 1>, scalar_prefetch = 0 : i64, scratch_operands = 4 : i64, tpu.core_type = #tpu.core_type<tc>, window_params = [{transform_indices = @transform_0, window_bounds = array<i64: 1, 8, 32>}, {pipeline_mode = #tpu.pipeline_mode<synchronous>, transform_indices = @transform_1, window_bounds = array<i64: 16, 32>}, {pipeline_mode = #tpu.pipeline_mode<synchronous>, transform_indices = @transform_2, window_bounds = array<i64: 24, 32>}, {pipeline_mode = #tpu.pipeline_mode<synchronous>, transform_indices = @transform_3, window_bounds = array<i64: 32, 32>}, {pipeline_mode = #tpu.pipeline_mode<synchronous>, transform_indices = @transform_4, window_bounds = array<i64: 32, 32>}, {pipeline_mode = #tpu.pipeline_mode<synchronous>, transform_indices = @transform_5, window_bounds = array<i64: 32, 32>}, {pipeline_mode = #tpu.pipeline_mode<synchronous>, transform_indices = @transform_6, window_bounds = array<i64: 32, 32>}, {pipeline_mode = #tpu.pipeline_mode<synchronous>, transform_indices = @transform_7, window_bounds = array<i64: 32, 128>}, {pipeline_mode = #tpu.pipeline_mode<synchronous>, transform_indices = @transform_8, window_bounds = array<i64: 32, 32>}, {pipeline_mode = #tpu.pipeline_mode<synchronous>, transform_indices = @transform_9, window_bounds = array<i64: 128, 32>}, {transform_indices = @transform_10, window_bounds = array<i64: 1, 8, 32>}]} {
    %c0_i32 = arith.constant 0 : i32
    %0 = arith.cmpi eq, %arg1, %c0_i32 : i32
    %1 = arith.extui %0 : i1 to i32
    %c0_i32_0 = arith.constant 0 : i32
    %2 = arith.cmpi ne, %1, %c0_i32_0 : i32
    scf.if %2 {
      %cst_130 = arith.constant 0.000000e+00 : f32
      %363 = vector.broadcast %cst_130 : f32 to vector<2x32xf32>
      %c0_131 = arith.constant 0 : index
      %c0_132 = arith.constant 0 : index
      %364 = vector.load %arg14[%c0_131, %c0_132] : memref<2x32xf32, #tpu.memory_space<vmem>>, vector<2x32xf32>
      tpu.vector_store %arg14[%c0_131, %c0_132], %363 {strides = array<i32>} : memref<2x32xf32, #tpu.memory_space<vmem>>, vector<2x32xf32>,
      %cst_133 = arith.constant 0.000000e+00 : f32
      %365 = vector.broadcast %cst_133 : f32 to vector<1x32xf32>
      %c0_134 = arith.constant 0 : index
      %c0_135 = arith.constant 0 : index
      %366 = vector.load %arg15[%c0_134, %c0_135] : memref<1x32xf32, #tpu.memory_space<vmem>>, vector<1x32xf32>
      tpu.vector_store %arg15[%c0_134, %c0_135], %365 {strides = array<i32>} : memref<1x32xf32, #tpu.memory_space<vmem>>, vector<1x32xf32>,
      %cst_136 = arith.constant 0.000000e+00 : f32
      %367 = vector.broadcast %cst_136 : f32 to vector<1x32xf32>
      %c0_137 = arith.constant 0 : index
      %c0_138 = arith.constant 0 : index
      %368 = vector.load %arg16[%c0_137, %c0_138] : memref<1x32xf32, #tpu.memory_space<vmem>>, vector<1x32xf32>
      tpu.vector_store %arg16[%c0_137, %c0_138], %367 {strides = array<i32>} : memref<1x32xf32, #tpu.memory_space<vmem>>, vector<1x32xf32>,
    } else {
    }
    %c0 = arith.constant 0 : index
    %c0_1 = arith.constant 0 : index
    %3 = vector.load %arg3[%c0, %c0_1] : memref<16x32xf32, #tpu.memory_space<vmem>>, vector<16x32xf32>
    %4 = vector.extract_strided_slice %3 {offsets = [0, 0], sizes = [1, 32], strides = [1, 1]} : vector<16x32xf32> to vector<1x32xf32>
    %5 = vector.extract_strided_slice %3 {offsets = [1, 0], sizes = [1, 32], strides = [1, 1]} : vector<16x32xf32> to vector<1x32xf32>
    %6 = vector.extract_strided_slice %3 {offsets = [2, 0], sizes = [1, 32], strides = [1, 1]} : vector<16x32xf32> to vector<1x32xf32>
    %7 = vector.extract_strided_slice %3 {offsets = [3, 0], sizes = [1, 32], strides = [1, 1]} : vector<16x32xf32> to vector<1x32xf32>
    %8 = vector.extract_strided_slice %3 {offsets = [4, 0], sizes = [1, 32], strides = [1, 1]} : vector<16x32xf32> to vector<1x32xf32>
    %9 = vector.extract_strided_slice %3 {offsets = [5, 0], sizes = [1, 32], strides = [1, 1]} : vector<16x32xf32> to vector<1x32xf32>
    %10 = vector.extract_strided_slice %3 {offsets = [6, 0], sizes = [1, 32], strides = [1, 1]} : vector<16x32xf32> to vector<1x32xf32>
    %11 = vector.extract_strided_slice %3 {offsets = [7, 0], sizes = [1, 32], strides = [1, 1]} : vector<16x32xf32> to vector<1x32xf32>
    %12 = vector.extract_strided_slice %3 {offsets = [8, 0], sizes = [1, 32], strides = [1, 1]} : vector<16x32xf32> to vector<1x32xf32>
    %13 = vector.extract_strided_slice %3 {offsets = [9, 0], sizes = [1, 32], strides = [1, 1]} : vector<16x32xf32> to vector<1x32xf32>
    %14 = vector.extract_strided_slice %3 {offsets = [10, 0], sizes = [1, 32], strides = [1, 1]} : vector<16x32xf32> to vector<1x32xf32>
    %c0_2 = arith.constant 0 : index
    %c0_3 = arith.constant 0 : index
    %c0_4 = arith.constant 0 : index
    %15 = vector.load %arg2[%c0_2, %c0_3, %c0_4] : memref<1x8x32xbf16, #tpu.memory_space<vmem>>, vector<1x8x32xbf16>
    %16 = vector.shape_cast %15 : vector<1x8x32xbf16> to vector<8x32xbf16>
    %17 = arith.extf %16 : vector<8x32xbf16> to vector<8x32xf32>
    %cst = arith.constant dense<0.000000e+00> : vector<8xf32>
    %18 = vector.multi_reduction <add>, %17, %cst [1] : vector<8x32xf32> to vector<8xf32>
    %19 = vector.shape_cast %18 : vector<8xf32> to vector<8x1xf32>
    %cst_5 = arith.constant 3.200000e+01 : f32
    %20 = vector.broadcast %cst_5 : f32 to vector<8x1xf32>
    %21 = arith.divf %19, %20 : vector<8x1xf32>
    %22 = vector.broadcast %21 : vector<8x1xf32> to vector<8x32xf32>
    %23 = arith.subf %17, %22 : vector<8x32xf32>
    %24 = arith.mulf %23, %23 : vector<8x32xf32>
    %cst_6 = arith.constant dense<0.000000e+00> : vector<8xf32>
    %25 = vector.multi_reduction <add>, %24, %cst_6 [1] : vector<8x32xf32> to vector<8xf32>
    %26 = vector.shape_cast %25 : vector<8xf32> to vector<8x1xf32>
    %cst_7 = arith.constant 3.200000e+01 : f32
    %27 = vector.broadcast %cst_7 : f32 to vector<8x1xf32>
    %28 = arith.divf %26, %27 : vector<8x1xf32>
    %29 = vector.broadcast %21 : vector<8x1xf32> to vector<8x32xf32>
    %30 = arith.subf %17, %29 : vector<8x32xf32>
    %cst_8 = arith.constant 9.99999974E-6 : f32
    %31 = vector.broadcast %cst_8 : f32 to vector<8x1xf32>
    %32 = arith.addf %28, %31 : vector<8x1xf32>
    %33 = math.rsqrt %32 : vector<8x1xf32>
    %34 = vector.broadcast %33 : vector<8x1xf32> to vector<8x32xf32>
    %35 = arith.mulf %30, %34 : vector<8x32xf32>
    %36 = vector.broadcast %4 : vector<1x32xf32> to vector<8x32xf32>
    %37 = arith.mulf %35, %36 : vector<8x32xf32>
    %38 = vector.broadcast %5 : vector<1x32xf32> to vector<8x32xf32>
    %39 = arith.addf %37, %38 : vector<8x32xf32>
    %40 = tpu.iota {dimensions = array<i32: 0>} : vector<8x32xi32>
    %cst_9 = arith.constant dense<0.000000e+00> : vector<8xf32>
    %41 = vector.multi_reduction <add>, %39, %cst_9 [1] : vector<8x32xf32> to vector<8xf32>
    %42 = vector.shape_cast %41 : vector<8xf32> to vector<8x1xf32>
    %cst_10 = arith.constant 3.200000e+01 : f32
    %43 = vector.broadcast %cst_10 : f32 to vector<8x1xf32>
    %44 = arith.divf %42, %43 : vector<8x1xf32>
    %45 = vector.broadcast %44 : vector<8x1xf32> to vector<8x32xf32>
    %46 = arith.subf %39, %45 : vector<8x32xf32>
    %47 = arith.mulf %46, %46 : vector<8x32xf32>
    %cst_11 = arith.constant dense<0.000000e+00> : vector<8xf32>
    %48 = vector.multi_reduction <add>, %47, %cst_11 [1] : vector<8x32xf32> to vector<8xf32>
    %49 = vector.shape_cast %48 : vector<8xf32> to vector<8x1xf32>
    %cst_12 = arith.constant 3.200000e+01 : f32
    %50 = vector.broadcast %cst_12 : f32 to vector<8x1xf32>
    %51 = arith.divf %49, %50 : vector<8x1xf32>
    %52 = vector.broadcast %44 : vector<8x1xf32> to vector<8x32xf32>
    %53 = arith.subf %39, %52 : vector<8x32xf32>
    %cst_13 = arith.constant 9.99999974E-6 : f32
    %54 = vector.broadcast %cst_13 : f32 to vector<8x1xf32>
    %55 = arith.addf %51, %54 : vector<8x1xf32>
    %56 = math.rsqrt %55 : vector<8x1xf32>
    %57 = vector.broadcast %56 : vector<8x1xf32> to vector<8x32xf32>
    %58 = arith.mulf %53, %57 : vector<8x32xf32>
    %59 = vector.broadcast %6 : vector<1x32xf32> to vector<8x32xf32>
    %60 = arith.mulf %58, %59 : vector<8x32xf32>
    %61 = vector.broadcast %7 : vector<1x32xf32> to vector<8x32xf32>
    %62 = arith.addf %60, %61 : vector<8x32xf32>
    %c0_14 = arith.constant 0 : index
    %c0_15 = arith.constant 0 : index
    %63 = vector.load %arg15[%c0_14, %c0_15] : memref<1x32xf32, #tpu.memory_space<vmem>>, vector<1x32xf32>
    %c0_i32_16 = arith.constant 0 : i32
    %64 = vector.broadcast %c0_i32_16 : i32 to vector<8x32xi32>
    %65 = arith.cmpi eq, %40, %64 : vector<8x32xi32>
    %c1_i32 = arith.constant 1 : i32
    %66 = tpu.dynamic_rotate %62 by %c1_i32 dim 0 : vector<8x32xf32>, i32 -> vector<8x32xf32>
    %67 = vector.shape_cast %63 : vector<1x32xf32> to vector<1x32xf32>
    %68 = vector.broadcast %67 : vector<1x32xf32> to vector<8x32xf32>
    %69 = arith.select %65, %68, %66 : vector<8x32xi1>, vector<8x32xf32>
    %70 = vector.extract_strided_slice %62 {offsets = [7, 0], sizes = [1, 32], strides = [1, 1]} : vector<8x32xf32> to vector<1x32xf32>
    %c0_17 = arith.constant 0 : index
    %c0_18 = arith.constant 0 : index
    %71 = vector.load %arg15[%c0_17, %c0_18] : memref<1x32xf32, #tpu.memory_space<vmem>>, vector<1x32xf32>
    tpu.vector_store %arg15[%c0_17, %c0_18], %70 {strides = array<i32>} : memref<1x32xf32, #tpu.memory_space<vmem>>, vector<1x32xf32>,
    %72 = vector.broadcast %10 : vector<1x32xf32> to vector<8x32xf32>
    %73 = arith.mulf %62, %72 : vector<8x32xf32>
    %cst_19 = arith.constant 1.000000e+00 : f32
    %74 = vector.broadcast %cst_19 : f32 to vector<1x32xf32>
    %75 = arith.subf %74, %10 : vector<1x32xf32>
    %76 = vector.broadcast %75 : vector<1x32xf32> to vector<8x32xf32>
    %77 = arith.mulf %69, %76 : vector<8x32xf32>
    %78 = arith.addf %73, %77 : vector<8x32xf32>
    %79 = vector.broadcast %11 : vector<1x32xf32> to vector<8x32xf32>
    %80 = arith.mulf %62, %79 : vector<8x32xf32>
    %cst_20 = arith.constant 1.000000e+00 : f32
    %81 = vector.broadcast %cst_20 : f32 to vector<1x32xf32>
    %82 = arith.subf %81, %11 : vector<1x32xf32>
    %83 = vector.broadcast %82 : vector<1x32xf32> to vector<8x32xf32>
    %84 = arith.mulf %69, %83 : vector<8x32xf32>
    %85 = arith.addf %80, %84 : vector<8x32xf32>
    %86 = vector.broadcast %12 : vector<1x32xf32> to vector<8x32xf32>
    %87 = arith.mulf %62, %86 : vector<8x32xf32>
    %cst_21 = arith.constant 1.000000e+00 : f32
    %88 = vector.broadcast %cst_21 : f32 to vector<1x32xf32>
    %89 = arith.subf %88, %12 : vector<1x32xf32>
    %90 = vector.broadcast %89 : vector<1x32xf32> to vector<8x32xf32>
    %91 = arith.mulf %69, %90 : vector<8x32xf32>
    %92 = arith.addf %87, %91 : vector<8x32xf32>
    %93 = arith.truncf %78 : vector<8x32xf32> to vector<8x32xbf16>
    %c0_22 = arith.constant 0 : index
    %c0_23 = arith.constant 0 : index
    %94 = vector.load %arg5[%c0_22, %c0_23] : memref<32x32xbf16, #tpu.memory_space<vmem>>, vector<32x32xbf16>
    %cst_24 = arith.constant dense<0.000000e+00> : vector<8x32xf32>
    %95 = tpu.matmul %93, %94, %cst_24 {dimension_numbers = #tpu.dot_dimension_numbers<[1], [0], [0], [1], [0, 0, 1, 1], [], []>} : vector<8x32xbf16>, vector<32x32xbf16>, vector<8x32xf32> -> vector<8x32xf32>
    %96 = arith.truncf %85 : vector<8x32xf32> to vector<8x32xbf16>
    %c0_25 = arith.constant 0 : index
    %c0_26 = arith.constant 0 : index
    %97 = vector.load %arg6[%c0_25, %c0_26] : memref<32x32xbf16, #tpu.memory_space<vmem>>, vector<32x32xbf16>
    %cst_27 = arith.constant dense<0.000000e+00> : vector<8x32xf32>
    %98 = tpu.matmul %96, %97, %cst_27 {dimension_numbers = #tpu.dot_dimension_numbers<[1], [0], [0], [1], [0, 0, 1, 1], [], []>} : vector<8x32xbf16>, vector<32x32xbf16>, vector<8x32xf32> -> vector<8x32xf32>
    %99 = arith.truncf %92 : vector<8x32xf32> to vector<8x32xbf16>
    %c0_28 = arith.constant 0 : index
    %c0_29 = arith.constant 0 : index
    %100 = vector.load %arg7[%c0_28, %c0_29] : memref<32x32xbf16, #tpu.memory_space<vmem>>, vector<32x32xbf16>
    %cst_30 = arith.constant dense<0.000000e+00> : vector<8x32xf32>
    %101 = tpu.matmul %99, %100, %cst_30 {dimension_numbers = #tpu.dot_dimension_numbers<[1], [0], [0], [1], [0, 0, 1, 1], [], []>} : vector<8x32xbf16>, vector<32x32xbf16>, vector<8x32xf32> -> vector<8x32xf32>
    %cst_31 = arith.constant 6.000000e+01 : f32
    %102 = vector.broadcast %cst_31 : f32 to vector<8x32xf32>
    %103 = arith.minimumf %95, %102 : vector<8x32xf32>
    %104 = math.exp %103 : vector<8x32xf32>
    %105 = arith.mulf %104, %98 : vector<8x32xf32>
    %c0_32 = arith.constant 0 : index
    %c0_33 = arith.constant 0 : index
    %106 = vector.load %arg13[%c0_32, %c0_33] : memref<16x32xf32, #tpu.memory_space<vmem>>, vector<8x32xf32>
    tpu.vector_store %arg13[%c0_32, %c0_33], %105 {strides = array<i32>} : memref<16x32xf32, #tpu.memory_space<vmem>>, vector<8x32xf32>,
    %c8 = arith.constant 8 : index
    %c0_34 = arith.constant 0 : index
    %107 = vector.load %arg13[%c8, %c0_34] : memref<16x32xf32, #tpu.memory_space<vmem>>, vector<8x32xf32>
    tpu.vector_store %arg13[%c8, %c0_34], %104 {strides = array<i32>} : memref<16x32xf32, #tpu.memory_space<vmem>>, vector<8x32xf32>,
    %c0_35 = arith.constant 0 : index
    %c0_36 = arith.constant 0 : index
    %108 = vector.load %arg4[%c0_35, %c0_36] : memref<24x32xf32, #tpu.memory_space<vmem>>, vector<24x32xf32>
    %109 = vector.extract_strided_slice %108 {offsets = [0, 0], sizes = [8, 32], strides = [1, 1]} : vector<24x32xf32> to vector<8x32xf32>
    %110 = vector.extract_strided_slice %108 {offsets = [8, 0], sizes = [8, 32], strides = [1, 1]} : vector<24x32xf32> to vector<8x32xf32>
    %111 = vector.extract_strided_slice %108 {offsets = [16, 0], sizes = [1, 32], strides = [1, 1]} : vector<24x32xf32> to vector<1x32xf32>
    %112 = vector.extract_strided_slice %108 {offsets = [17, 0], sizes = [1, 32], strides = [1, 1]} : vector<24x32xf32> to vector<1x32xf32>
    %113 = tpu.iota {dimensions = array<i32: 0>} : vector<8x32xi32>
    %c0_i32_37 = arith.constant 0 : i32
    %c8_i32 = arith.constant 8 : i32
    %114 = arith.muli %c0_i32_37, %c8_i32 : i32
    %c0_i32_38 = arith.constant 0 : i32
    %115 = arith.addi %114, %c0_i32_38 : i32
    %116 = tpu.assume_multiple %115, 8 : i32
    %117 = arith.index_cast %116 : i32 to index
    %c0_39 = arith.constant 0 : index
    %118 = vector.load %arg13[%117, %c0_39] : memref<16x32xf32, #tpu.memory_space<vmem>>, vector<8x32xf32>
    %c0_40 = arith.constant 0 : index
    %c0_41 = arith.constant 0 : index
    %119 = vector.load %arg14[%c0_40, %c0_41] : memref<2x32xf32, #tpu.memory_space<vmem>>, vector<1x32xf32>
    %120 = vector.broadcast %112 : vector<1x32xf32> to vector<8x32xf32>
    %121 = arith.mulf %120, %118 : vector<8x32xf32>
    %cst_42 = arith.constant 0.000000e+00 : f32
    %122 = vector.broadcast %cst_42 : f32 to vector<8x32xf32>
    %123 = arith.addf %122, %121 : vector<8x32xf32>
    %124 = vector.broadcast %119 : vector<1x32xf32> to vector<8x32xf32>
    %125 = arith.mulf %109, %124 : vector<8x32xf32>
    %126 = arith.addf %123, %125 : vector<8x32xf32>
    %c1_i32_43 = arith.constant 1 : i32
    %127 = tpu.dynamic_rotate %118 by %c1_i32_43 dim 0 : vector<8x32xf32>, i32 -> vector<8x32xf32>
    %c1_i32_44 = arith.constant 1 : i32
    %128 = vector.broadcast %c1_i32_44 : i32 to vector<8x32xi32>
    %129 = arith.cmpi sge, %113, %128 : vector<8x32xi32>
    %cst_45 = arith.constant 0.000000e+00 : f32
    %130 = vector.broadcast %cst_45 : f32 to vector<8x32xf32>
    %131 = arith.select %129, %127, %130 : vector<8x32xi1>, vector<8x32xf32>
    %132 = vector.extract_strided_slice %109 {offsets = [0, 0], sizes = [1, 32], strides = [1, 1]} : vector<8x32xf32> to vector<1x32xf32>
    %133 = vector.broadcast %132 : vector<1x32xf32> to vector<8x32xf32>
    %134 = arith.mulf %133, %131 : vector<8x32xf32>
    %135 = arith.addf %126, %134 : vector<8x32xf32>
    %c2_i32 = arith.constant 2 : i32
    %136 = tpu.dynamic_rotate %118 by %c2_i32 dim 0 : vector<8x32xf32>, i32 -> vector<8x32xf32>
    %c2_i32_46 = arith.constant 2 : i32
    %137 = vector.broadcast %c2_i32_46 : i32 to vector<8x32xi32>
    %138 = arith.cmpi sge, %113, %137 : vector<8x32xi32>
    %cst_47 = arith.constant 0.000000e+00 : f32
    %139 = vector.broadcast %cst_47 : f32 to vector<8x32xf32>
    %140 = arith.select %138, %136, %139 : vector<8x32xi1>, vector<8x32xf32>
    %141 = vector.extract_strided_slice %109 {offsets = [1, 0], sizes = [1, 32], strides = [1, 1]} : vector<8x32xf32> to vector<1x32xf32>
    %142 = vector.broadcast %141 : vector<1x32xf32> to vector<8x32xf32>
    %143 = arith.mulf %142, %140 : vector<8x32xf32>
    %144 = arith.addf %135, %143 : vector<8x32xf32>
    %c3_i32 = arith.constant 3 : i32
    %145 = tpu.dynamic_rotate %118 by %c3_i32 dim 0 : vector<8x32xf32>, i32 -> vector<8x32xf32>
    %c3_i32_48 = arith.constant 3 : i32
    %146 = vector.broadcast %c3_i32_48 : i32 to vector<8x32xi32>
    %147 = arith.cmpi sge, %113, %146 : vector<8x32xi32>
    %cst_49 = arith.constant 0.000000e+00 : f32
    %148 = vector.broadcast %cst_49 : f32 to vector<8x32xf32>
    %149 = arith.select %147, %145, %148 : vector<8x32xi1>, vector<8x32xf32>
    %150 = vector.extract_strided_slice %109 {offsets = [2, 0], sizes = [1, 32], strides = [1, 1]} : vector<8x32xf32> to vector<1x32xf32>
    %151 = vector.broadcast %150 : vector<1x32xf32> to vector<8x32xf32>
    %152 = arith.mulf %151, %149 : vector<8x32xf32>
    %153 = arith.addf %144, %152 : vector<8x32xf32>
    %c4_i32 = arith.constant 4 : i32
    %154 = tpu.dynamic_rotate %118 by %c4_i32 dim 0 : vector<8x32xf32>, i32 -> vector<8x32xf32>
    %c4_i32_50 = arith.constant 4 : i32
    %155 = vector.broadcast %c4_i32_50 : i32 to vector<8x32xi32>
    %156 = arith.cmpi sge, %113, %155 : vector<8x32xi32>
    %cst_51 = arith.constant 0.000000e+00 : f32
    %157 = vector.broadcast %cst_51 : f32 to vector<8x32xf32>
    %158 = arith.select %156, %154, %157 : vector<8x32xi1>, vector<8x32xf32>
    %159 = vector.extract_strided_slice %109 {offsets = [3, 0], sizes = [1, 32], strides = [1, 1]} : vector<8x32xf32> to vector<1x32xf32>
    %160 = vector.broadcast %159 : vector<1x32xf32> to vector<8x32xf32>
    %161 = arith.mulf %160, %158 : vector<8x32xf32>
    %162 = arith.addf %153, %161 : vector<8x32xf32>
    %c5_i32 = arith.constant 5 : i32
    %163 = tpu.dynamic_rotate %118 by %c5_i32 dim 0 : vector<8x32xf32>, i32 -> vector<8x32xf32>
    %c5_i32_52 = arith.constant 5 : i32
    %164 = vector.broadcast %c5_i32_52 : i32 to vector<8x32xi32>
    %165 = arith.cmpi sge, %113, %164 : vector<8x32xi32>
    %cst_53 = arith.constant 0.000000e+00 : f32
    %166 = vector.broadcast %cst_53 : f32 to vector<8x32xf32>
    %167 = arith.select %165, %163, %166 : vector<8x32xi1>, vector<8x32xf32>
    %168 = vector.extract_strided_slice %109 {offsets = [4, 0], sizes = [1, 32], strides = [1, 1]} : vector<8x32xf32> to vector<1x32xf32>
    %169 = vector.broadcast %168 : vector<1x32xf32> to vector<8x32xf32>
    %170 = arith.mulf %169, %167 : vector<8x32xf32>
    %171 = arith.addf %162, %170 : vector<8x32xf32>
    %c6_i32 = arith.constant 6 : i32
    %172 = tpu.dynamic_rotate %118 by %c6_i32 dim 0 : vector<8x32xf32>, i32 -> vector<8x32xf32>
    %c6_i32_54 = arith.constant 6 : i32
    %173 = vector.broadcast %c6_i32_54 : i32 to vector<8x32xi32>
    %174 = arith.cmpi sge, %113, %173 : vector<8x32xi32>
    %cst_55 = arith.constant 0.000000e+00 : f32
    %175 = vector.broadcast %cst_55 : f32 to vector<8x32xf32>
    %176 = arith.select %174, %172, %175 : vector<8x32xi1>, vector<8x32xf32>
    %177 = vector.extract_strided_slice %109 {offsets = [5, 0], sizes = [1, 32], strides = [1, 1]} : vector<8x32xf32> to vector<1x32xf32>
    %178 = vector.broadcast %177 : vector<1x32xf32> to vector<8x32xf32>
    %179 = arith.mulf %178, %176 : vector<8x32xf32>
    %180 = arith.addf %171, %179 : vector<8x32xf32>
    %c7_i32 = arith.constant 7 : i32
    %181 = tpu.dynamic_rotate %118 by %c7_i32 dim 0 : vector<8x32xf32>, i32 -> vector<8x32xf32>
    %c7_i32_56 = arith.constant 7 : i32
    %182 = vector.broadcast %c7_i32_56 : i32 to vector<8x32xi32>
    %183 = arith.cmpi sge, %113, %182 : vector<8x32xi32>
    %cst_57 = arith.constant 0.000000e+00 : f32
    %184 = vector.broadcast %cst_57 : f32 to vector<8x32xf32>
    %185 = arith.select %183, %181, %184 : vector<8x32xi1>, vector<8x32xf32>
    %186 = vector.extract_strided_slice %109 {offsets = [6, 0], sizes = [1, 32], strides = [1, 1]} : vector<8x32xf32> to vector<1x32xf32>
    %187 = vector.broadcast %186 : vector<1x32xf32> to vector<8x32xf32>
    %188 = arith.mulf %187, %185 : vector<8x32xf32>
    %189 = arith.addf %180, %188 : vector<8x32xf32>
    %190 = arith.mulf %111, %119 : vector<1x32xf32>
    %191 = arith.mulf %110, %118 : vector<8x32xf32>
    %cst_58 = arith.constant dense<0.000000e+00> : vector<32xf32>
    %192 = vector.multi_reduction <add>, %191, %cst_58 [0] : vector<8x32xf32> to vector<32xf32>
    %193 = vector.shape_cast %192 : vector<32xf32> to vector<1x32xf32>
    %194 = arith.addf %190, %193 : vector<1x32xf32>
    %c0_59 = arith.constant 0 : index
    %c0_60 = arith.constant 0 : index
    %195 = vector.load %arg14[%c0_59, %c0_60] : memref<2x32xf32, #tpu.memory_space<vmem>>, vector<1x32xf32>
    tpu.vector_store %arg14[%c0_59, %c0_60], %194 {strides = array<i32>} : memref<2x32xf32, #tpu.memory_space<vmem>>, vector<1x32xf32>,
    %196 = arith.index_cast %116 : i32 to index
    %c0_61 = arith.constant 0 : index
    %197 = vector.load %arg13[%196, %c0_61] : memref<16x32xf32, #tpu.memory_space<vmem>>, vector<8x32xf32>
    tpu.vector_store %arg13[%196, %c0_61], %189 {strides = array<i32>} : memref<16x32xf32, #tpu.memory_space<vmem>>, vector<8x32xf32>,
    %c1_i32_62 = arith.constant 1 : i32
    %c0_i32_63 = arith.constant 0 : i32
    %c8_i32_64 = arith.constant 8 : i32
    %198 = arith.muli %c0_i32_63, %c8_i32_64 : i32
    %c8_i32_65 = arith.constant 8 : i32
    %199 = arith.addi %198, %c8_i32_65 : i32
    %200 = tpu.assume_multiple %199, 8 : i32
    %201 = arith.index_cast %200 : i32 to index
    %c0_66 = arith.constant 0 : index
    %202 = vector.load %arg13[%201, %c0_66] : memref<16x32xf32, #tpu.memory_space<vmem>>, vector<8x32xf32>
    %c1 = arith.constant 1 : index
    %c0_67 = arith.constant 0 : index
    %203 = vector.load %arg14[%c1, %c0_67] : memref<2x32xf32, #tpu.memory_space<vmem>>, vector<1x32xf32>
    %204 = vector.broadcast %112 : vector<1x32xf32> to vector<8x32xf32>
    %205 = arith.mulf %204, %202 : vector<8x32xf32>
    %cst_68 = arith.constant 9.99999971E-10 : f32
    %206 = vector.broadcast %cst_68 : f32 to vector<8x32xf32>
    %207 = arith.addf %206, %205 : vector<8x32xf32>
    %208 = vector.broadcast %203 : vector<1x32xf32> to vector<8x32xf32>
    %209 = arith.mulf %109, %208 : vector<8x32xf32>
    %210 = arith.addf %207, %209 : vector<8x32xf32>
    %c1_i32_69 = arith.constant 1 : i32
    %211 = tpu.dynamic_rotate %202 by %c1_i32_69 dim 0 : vector<8x32xf32>, i32 -> vector<8x32xf32>
    %c1_i32_70 = arith.constant 1 : i32
    %212 = vector.broadcast %c1_i32_70 : i32 to vector<8x32xi32>
    %213 = arith.cmpi sge, %113, %212 : vector<8x32xi32>
    %cst_71 = arith.constant 0.000000e+00 : f32
    %214 = vector.broadcast %cst_71 : f32 to vector<8x32xf32>
    %215 = arith.select %213, %211, %214 : vector<8x32xi1>, vector<8x32xf32>
    %216 = vector.extract_strided_slice %109 {offsets = [0, 0], sizes = [1, 32], strides = [1, 1]} : vector<8x32xf32> to vector<1x32xf32>
    %217 = vector.broadcast %216 : vector<1x32xf32> to vector<8x32xf32>
    %218 = arith.mulf %217, %215 : vector<8x32xf32>
    %219 = arith.addf %210, %218 : vector<8x32xf32>
    %c2_i32_72 = arith.constant 2 : i32
    %220 = tpu.dynamic_rotate %202 by %c2_i32_72 dim 0 : vector<8x32xf32>, i32 -> vector<8x32xf32>
    %c2_i32_73 = arith.constant 2 : i32
    %221 = vector.broadcast %c2_i32_73 : i32 to vector<8x32xi32>
    %222 = arith.cmpi sge, %113, %221 : vector<8x32xi32>
    %cst_74 = arith.constant 0.000000e+00 : f32
    %223 = vector.broadcast %cst_74 : f32 to vector<8x32xf32>
    %224 = arith.select %222, %220, %223 : vector<8x32xi1>, vector<8x32xf32>
    %225 = vector.extract_strided_slice %109 {offsets = [1, 0], sizes = [1, 32], strides = [1, 1]} : vector<8x32xf32> to vector<1x32xf32>
    %226 = vector.broadcast %225 : vector<1x32xf32> to vector<8x32xf32>
    %227 = arith.mulf %226, %224 : vector<8x32xf32>
    %228 = arith.addf %219, %227 : vector<8x32xf32>
    %c3_i32_75 = arith.constant 3 : i32
    %229 = tpu.dynamic_rotate %202 by %c3_i32_75 dim 0 : vector<8x32xf32>, i32 -> vector<8x32xf32>
    %c3_i32_76 = arith.constant 3 : i32
    %230 = vector.broadcast %c3_i32_76 : i32 to vector<8x32xi32>
    %231 = arith.cmpi sge, %113, %230 : vector<8x32xi32>
    %cst_77 = arith.constant 0.000000e+00 : f32
    %232 = vector.broadcast %cst_77 : f32 to vector<8x32xf32>
    %233 = arith.select %231, %229, %232 : vector<8x32xi1>, vector<8x32xf32>
    %234 = vector.extract_strided_slice %109 {offsets = [2, 0], sizes = [1, 32], strides = [1, 1]} : vector<8x32xf32> to vector<1x32xf32>
    %235 = vector.broadcast %234 : vector<1x32xf32> to vector<8x32xf32>
    %236 = arith.mulf %235, %233 : vector<8x32xf32>
    %237 = arith.addf %228, %236 : vector<8x32xf32>
    %c4_i32_78 = arith.constant 4 : i32
    %238 = tpu.dynamic_rotate %202 by %c4_i32_78 dim 0 : vector<8x32xf32>, i32 -> vector<8x32xf32>
    %c4_i32_79 = arith.constant 4 : i32
    %239 = vector.broadcast %c4_i32_79 : i32 to vector<8x32xi32>
    %240 = arith.cmpi sge, %113, %239 : vector<8x32xi32>
    %cst_80 = arith.constant 0.000000e+00 : f32
    %241 = vector.broadcast %cst_80 : f32 to vector<8x32xf32>
    %242 = arith.select %240, %238, %241 : vector<8x32xi1>, vector<8x32xf32>
    %243 = vector.extract_strided_slice %109 {offsets = [3, 0], sizes = [1, 32], strides = [1, 1]} : vector<8x32xf32> to vector<1x32xf32>
    %244 = vector.broadcast %243 : vector<1x32xf32> to vector<8x32xf32>
    %245 = arith.mulf %244, %242 : vector<8x32xf32>
    %246 = arith.addf %237, %245 : vector<8x32xf32>
    %c5_i32_81 = arith.constant 5 : i32
    %247 = tpu.dynamic_rotate %202 by %c5_i32_81 dim 0 : vector<8x32xf32>, i32 -> vector<8x32xf32>
    %c5_i32_82 = arith.constant 5 : i32
    %248 = vector.broadcast %c5_i32_82 : i32 to vector<8x32xi32>
    %249 = arith.cmpi sge, %113, %248 : vector<8x32xi32>
    %cst_83 = arith.constant 0.000000e+00 : f32
    %250 = vector.broadcast %cst_83 : f32 to vector<8x32xf32>
    %251 = arith.select %249, %247, %250 : vector<8x32xi1>, vector<8x32xf32>
    %252 = vector.extract_strided_slice %109 {offsets = [4, 0], sizes = [1, 32], strides = [1, 1]} : vector<8x32xf32> to vector<1x32xf32>
    %253 = vector.broadcast %252 : vector<1x32xf32> to vector<8x32xf32>
    %254 = arith.mulf %253, %251 : vector<8x32xf32>
    %255 = arith.addf %246, %254 : vector<8x32xf32>
    %c6_i32_84 = arith.constant 6 : i32
    %256 = tpu.dynamic_rotate %202 by %c6_i32_84 dim 0 : vector<8x32xf32>, i32 -> vector<8x32xf32>
    %c6_i32_85 = arith.constant 6 : i32
    %257 = vector.broadcast %c6_i32_85 : i32 to vector<8x32xi32>
    %258 = arith.cmpi sge, %113, %257 : vector<8x32xi32>
    %cst_86 = arith.constant 0.000000e+00 : f32
    %259 = vector.broadcast %cst_86 : f32 to vector<8x32xf32>
    %260 = arith.select %258, %256, %259 : vector<8x32xi1>, vector<8x32xf32>
    %261 = vector.extract_strided_slice %109 {offsets = [5, 0], sizes = [1, 32], strides = [1, 1]} : vector<8x32xf32> to vector<1x32xf32>
    %262 = vector.broadcast %261 : vector<1x32xf32> to vector<8x32xf32>
    %263 = arith.mulf %262, %260 : vector<8x32xf32>
    %264 = arith.addf %255, %263 : vector<8x32xf32>
    %c7_i32_87 = arith.constant 7 : i32
    %265 = tpu.dynamic_rotate %202 by %c7_i32_87 dim 0 : vector<8x32xf32>, i32 -> vector<8x32xf32>
    %c7_i32_88 = arith.constant 7 : i32
    %266 = vector.broadcast %c7_i32_88 : i32 to vector<8x32xi32>
    %267 = arith.cmpi sge, %113, %266 : vector<8x32xi32>
    %cst_89 = arith.constant 0.000000e+00 : f32
    %268 = vector.broadcast %cst_89 : f32 to vector<8x32xf32>
    %269 = arith.select %267, %265, %268 : vector<8x32xi1>, vector<8x32xf32>
    %270 = vector.extract_strided_slice %109 {offsets = [6, 0], sizes = [1, 32], strides = [1, 1]} : vector<8x32xf32> to vector<1x32xf32>
    %271 = vector.broadcast %270 : vector<1x32xf32> to vector<8x32xf32>
    %272 = arith.mulf %271, %269 : vector<8x32xf32>
    %273 = arith.addf %264, %272 : vector<8x32xf32>
    %274 = arith.mulf %111, %203 : vector<1x32xf32>
    %275 = arith.mulf %110, %202 : vector<8x32xf32>
    %cst_90 = arith.constant dense<0.000000e+00> : vector<32xf32>
    %276 = vector.multi_reduction <add>, %275, %cst_90 [0] : vector<8x32xf32> to vector<32xf32>
    %277 = vector.shape_cast %276 : vector<32xf32> to vector<1x32xf32>
    %278 = arith.addf %274, %277 : vector<1x32xf32>
    %c1_91 = arith.constant 1 : index
    %c0_92 = arith.constant 0 : index
    %279 = vector.load %arg14[%c1_91, %c0_92] : memref<2x32xf32, #tpu.memory_space<vmem>>, vector<1x32xf32>
    tpu.vector_store %arg14[%c1_91, %c0_92], %278 {strides = array<i32>} : memref<2x32xf32, #tpu.memory_space<vmem>>, vector<1x32xf32>,
    %280 = arith.index_cast %200 : i32 to index
    %c0_93 = arith.constant 0 : index
    %281 = vector.load %arg13[%280, %c0_93] : memref<16x32xf32, #tpu.memory_space<vmem>>, vector<8x32xf32>
    tpu.vector_store %arg13[%280, %c0_93], %273 {strides = array<i32>} : memref<16x32xf32, #tpu.memory_space<vmem>>, vector<8x32xf32>,
    %c1_i32_94 = arith.constant 1 : i32
    %282 = arith.negf %101 : vector<8x32xf32>
    %283 = math.exp %282 : vector<8x32xf32>
    %cst_95 = arith.constant 1.000000e+00 : f32
    %284 = vector.broadcast %cst_95 : f32 to vector<8x32xf32>
    %285 = arith.addf %284, %283 : vector<8x32xf32>
    %286 = arith.divf %284, %285 : vector<8x32xf32>
    %c0_96 = arith.constant 0 : index
    %c0_97 = arith.constant 0 : index
    %287 = vector.load %arg13[%c0_96, %c0_97] : memref<16x32xf32, #tpu.memory_space<vmem>>, vector<8x32xf32>
    %c8_98 = arith.constant 8 : index
    %c0_99 = arith.constant 0 : index
    %288 = vector.load %arg13[%c8_98, %c0_99] : memref<16x32xf32, #tpu.memory_space<vmem>>, vector<8x32xf32>
    %289 = arith.divf %287, %288 : vector<8x32xf32>
    %290 = arith.mulf %286, %289 : vector<8x32xf32>
    %291 = arith.truncf %290 : vector<8x32xf32> to vector<8x32xbf16>
    %c0_100 = arith.constant 0 : index
    %c0_101 = arith.constant 0 : index
    %292 = vector.load %arg8[%c0_100, %c0_101] : memref<32x32xbf16, #tpu.memory_space<vmem>>, vector<32x32xbf16>
    %cst_102 = arith.constant dense<0.000000e+00> : vector<8x32xf32>
    %293 = tpu.matmul %291, %292, %cst_102 {dimension_numbers = #tpu.dot_dimension_numbers<[1], [0], [0], [1], [0, 0, 1, 1], [], []>} : vector<8x32xbf16>, vector<32x32xbf16>, vector<8x32xf32> -> vector<8x32xf32>
    %294 = arith.addf %39, %293 : vector<8x32xf32>
    %cst_103 = arith.constant dense<0.000000e+00> : vector<8xf32>
    %295 = vector.multi_reduction <add>, %294, %cst_103 [1] : vector<8x32xf32> to vector<8xf32>
    %296 = vector.shape_cast %295 : vector<8xf32> to vector<8x1xf32>
    %cst_104 = arith.constant 3.200000e+01 : f32
    %297 = vector.broadcast %cst_104 : f32 to vector<8x1xf32>
    %298 = arith.divf %296, %297 : vector<8x1xf32>
    %299 = vector.broadcast %298 : vector<8x1xf32> to vector<8x32xf32>
    %300 = arith.subf %294, %299 : vector<8x32xf32>
    %301 = arith.mulf %300, %300 : vector<8x32xf32>
    %cst_105 = arith.constant dense<0.000000e+00> : vector<8xf32>
    %302 = vector.multi_reduction <add>, %301, %cst_105 [1] : vector<8x32xf32> to vector<8xf32>
    %303 = vector.shape_cast %302 : vector<8xf32> to vector<8x1xf32>
    %cst_106 = arith.constant 3.200000e+01 : f32
    %304 = vector.broadcast %cst_106 : f32 to vector<8x1xf32>
    %305 = arith.divf %303, %304 : vector<8x1xf32>
    %306 = vector.broadcast %298 : vector<8x1xf32> to vector<8x32xf32>
    %307 = arith.subf %294, %306 : vector<8x32xf32>
    %cst_107 = arith.constant 9.99999974E-6 : f32
    %308 = vector.broadcast %cst_107 : f32 to vector<8x1xf32>
    %309 = arith.addf %305, %308 : vector<8x1xf32>
    %310 = math.rsqrt %309 : vector<8x1xf32>
    %311 = vector.broadcast %310 : vector<8x1xf32> to vector<8x32xf32>
    %312 = arith.mulf %307, %311 : vector<8x32xf32>
    %313 = vector.broadcast %8 : vector<1x32xf32> to vector<8x32xf32>
    %314 = arith.mulf %312, %313 : vector<8x32xf32>
    %315 = vector.broadcast %9 : vector<1x32xf32> to vector<8x32xf32>
    %316 = arith.addf %314, %315 : vector<8x32xf32>
    %c0_108 = arith.constant 0 : index
    %c0_109 = arith.constant 0 : index
    %317 = vector.load %arg16[%c0_108, %c0_109] : memref<1x32xf32, #tpu.memory_space<vmem>>, vector<1x32xf32>
    %c0_i32_110 = arith.constant 0 : i32
    %318 = vector.broadcast %c0_i32_110 : i32 to vector<8x32xi32>
    %319 = arith.cmpi eq, %40, %318 : vector<8x32xi32>
    %c1_i32_111 = arith.constant 1 : i32
    %320 = tpu.dynamic_rotate %316 by %c1_i32_111 dim 0 : vector<8x32xf32>, i32 -> vector<8x32xf32>
    %321 = vector.shape_cast %317 : vector<1x32xf32> to vector<1x32xf32>
    %322 = vector.broadcast %321 : vector<1x32xf32> to vector<8x32xf32>
    %323 = arith.select %319, %322, %320 : vector<8x32xi1>, vector<8x32xf32>
    %324 = vector.extract_strided_slice %316 {offsets = [7, 0], sizes = [1, 32], strides = [1, 1]} : vector<8x32xf32> to vector<1x32xf32>
    %c0_112 = arith.constant 0 : index
    %c0_113 = arith.constant 0 : index
    %325 = vector.load %arg16[%c0_112, %c0_113] : memref<1x32xf32, #tpu.memory_space<vmem>>, vector<1x32xf32>
    tpu.vector_store %arg16[%c0_112, %c0_113], %324 {strides = array<i32>} : memref<1x32xf32, #tpu.memory_space<vmem>>, vector<1x32xf32>,
    %326 = vector.broadcast %13 : vector<1x32xf32> to vector<8x32xf32>
    %327 = arith.mulf %316, %326 : vector<8x32xf32>
    %cst_114 = arith.constant 1.000000e+00 : f32
    %328 = vector.broadcast %cst_114 : f32 to vector<1x32xf32>
    %329 = arith.subf %328, %13 : vector<1x32xf32>
    %330 = vector.broadcast %329 : vector<1x32xf32> to vector<8x32xf32>
    %331 = arith.mulf %323, %330 : vector<8x32xf32>
    %332 = arith.addf %327, %331 : vector<8x32xf32>
    %333 = vector.broadcast %14 : vector<1x32xf32> to vector<8x32xf32>
    %334 = arith.mulf %316, %333 : vector<8x32xf32>
    %cst_115 = arith.constant 1.000000e+00 : f32
    %335 = vector.broadcast %cst_115 : f32 to vector<1x32xf32>
    %336 = arith.subf %335, %14 : vector<1x32xf32>
    %337 = vector.broadcast %336 : vector<1x32xf32> to vector<8x32xf32>
    %338 = arith.mulf %323, %337 : vector<8x32xf32>
    %339 = arith.addf %334, %338 : vector<8x32xf32>
    %340 = arith.truncf %332 : vector<8x32xf32> to vector<8x32xbf16>
    %c0_116 = arith.constant 0 : index
    %c0_117 = arith.constant 0 : index
    %341 = vector.load %arg9[%c0_116, %c0_117] : memref<32x128xbf16, #tpu.memory_space<vmem>>, vector<32x128xbf16>
    %cst_118 = arith.constant dense<0.000000e+00> : vector<8x128xf32>
    %342 = tpu.matmul %340, %341, %cst_118 {dimension_numbers = #tpu.dot_dimension_numbers<[1], [0], [0], [1], [0, 0, 1, 1], [], []>} : vector<8x32xbf16>, vector<32x128xbf16>, vector<8x128xf32> -> vector<8x128xf32>
    %cst_119 = arith.constant 0.000000e+00 : f32
    %343 = vector.broadcast %cst_119 : f32 to vector<8x128xf32>
    %344 = arith.maximumf %342, %343 : vector<8x128xf32>
    %345 = arith.mulf %344, %344 : vector<8x128xf32>
    %346 = arith.truncf %345 : vector<8x128xf32> to vector<8x128xbf16>
    %c0_120 = arith.constant 0 : index
    %c0_121 = arith.constant 0 : index
    %347 = vector.load %arg11[%c0_120, %c0_121] : memref<128x32xbf16, #tpu.memory_space<vmem>>, vector<128x32xbf16>
    %cst_122 = arith.constant dense<0.000000e+00> : vector<8x32xf32>
    %348 = tpu.matmul %346, %347, %cst_122 {dimension_numbers = #tpu.dot_dimension_numbers<[1], [0], [0], [1], [0, 0, 1, 1], [], []>} : vector<8x128xbf16>, vector<128x32xbf16>, vector<8x32xf32> -> vector<8x32xf32>
    %349 = arith.truncf %339 : vector<8x32xf32> to vector<8x32xbf16>
    %c0_123 = arith.constant 0 : index
    %c0_124 = arith.constant 0 : index
    %350 = vector.load %arg10[%c0_123, %c0_124] : memref<32x32xbf16, #tpu.memory_space<vmem>>, vector<32x32xbf16>
    %cst_125 = arith.constant dense<0.000000e+00> : vector<8x32xf32>
    %351 = tpu.matmul %349, %350, %cst_125 {dimension_numbers = #tpu.dot_dimension_numbers<[1], [0], [0], [1], [0, 0, 1, 1], [], []>} : vector<8x32xbf16>, vector<32x32xbf16>, vector<8x32xf32> -> vector<8x32xf32>
    %352 = arith.negf %351 : vector<8x32xf32>
    %353 = math.exp %352 : vector<8x32xf32>
    %cst_126 = arith.constant 1.000000e+00 : f32
    %354 = vector.broadcast %cst_126 : f32 to vector<8x32xf32>
    %355 = arith.addf %354, %353 : vector<8x32xf32>
    %356 = arith.divf %354, %355 : vector<8x32xf32>
    %357 = arith.mulf %356, %348 : vector<8x32xf32>
    %358 = arith.addf %294, %357 : vector<8x32xf32>
    %359 = arith.truncf %358 : vector<8x32xf32> to vector<8x32xbf16>
    %c0_127 = arith.constant 0 : index
    %c0_128 = arith.constant 0 : index
    %c0_129 = arith.constant 0 : index
    %360 = vector.load %arg12[%c0_127, %c0_128, %c0_129] : memref<1x8x32xbf16, #tpu.memory_space<vmem>>, vector<1x8x32xbf16>
    %361 = vector.shape_cast %360 : vector<1x8x32xbf16> to vector<8x32xbf16>
    %362 = vector.shape_cast %359 : vector<8x32xbf16> to vector<1x8x32xbf16>
    tpu.vector_store %arg12[%c0_127, %c0_128, %c0_129], %362 {strides = array<i32>} : memref<1x8x32xbf16, #tpu.memory_space<vmem>>, vector<1x8x32xbf16>,
    return
  }
  func.func @transform_0(%arg0: i32, %arg1: i32) -> (i32, i32, i32) {
    %c0_i32 = arith.constant 0 : i32
    %c0_i32_0 = arith.constant 0 : i32
    return %arg0, %arg1, %c0_i32 : i32, i32, i32
  }
  func.func @transform_1(%arg0: i32, %arg1: i32) -> (i32, i32) {
    %c0_i32 = arith.constant 0 : i32
    %c0_i32_0 = arith.constant 0 : i32
    %c0_i32_1 = arith.constant 0 : i32
    return %c0_i32, %c0_i32_0 : i32, i32
  }
  func.func @transform_2(%arg0: i32, %arg1: i32) -> (i32, i32) {
    %c0_i32 = arith.constant 0 : i32
    %c0_i32_0 = arith.constant 0 : i32
    %c0_i32_1 = arith.constant 0 : i32
    return %c0_i32, %c0_i32_0 : i32, i32
  }
  func.func @transform_3(%arg0: i32, %arg1: i32) -> (i32, i32) {
    %c0_i32 = arith.constant 0 : i32
    %c0_i32_0 = arith.constant 0 : i32
    %c0_i32_1 = arith.constant 0 : i32
    return %c0_i32, %c0_i32_0 : i32, i32
  }
  func.func @transform_4(%arg0: i32, %arg1: i32) -> (i32, i32) {
    %c0_i32 = arith.constant 0 : i32
    %c0_i32_0 = arith.constant 0 : i32
    %c0_i32_1 = arith.constant 0 : i32
    return %c0_i32, %c0_i32_0 : i32, i32
  }
  func.func @transform_5(%arg0: i32, %arg1: i32) -> (i32, i32) {
    %c0_i32 = arith.constant 0 : i32
    %c0_i32_0 = arith.constant 0 : i32
    %c0_i32_1 = arith.constant 0 : i32
    return %c0_i32, %c0_i32_0 : i32, i32
  }
  func.func @transform_6(%arg0: i32, %arg1: i32) -> (i32, i32) {
    %c0_i32 = arith.constant 0 : i32
    %c0_i32_0 = arith.constant 0 : i32
    %c0_i32_1 = arith.constant 0 : i32
    return %c0_i32, %c0_i32_0 : i32, i32
  }
  func.func @transform_7(%arg0: i32, %arg1: i32) -> (i32, i32) {
    %c0_i32 = arith.constant 0 : i32
    %c0_i32_0 = arith.constant 0 : i32
    %c0_i32_1 = arith.constant 0 : i32
    return %c0_i32, %c0_i32_0 : i32, i32
  }
  func.func @transform_8(%arg0: i32, %arg1: i32) -> (i32, i32) {
    %c0_i32 = arith.constant 0 : i32
    %c0_i32_0 = arith.constant 0 : i32
    %c0_i32_1 = arith.constant 0 : i32
    return %c0_i32, %c0_i32_0 : i32, i32
  }
  func.func @transform_9(%arg0: i32, %arg1: i32) -> (i32, i32) {
    %c0_i32 = arith.constant 0 : i32
    %c0_i32_0 = arith.constant 0 : i32
    %c0_i32_1 = arith.constant 0 : i32
    return %c0_i32, %c0_i32_0 : i32, i32
  }
  func.func @transform_10(%arg0: i32, %arg1: i32) -> (i32, i32, i32) {
    %c0_i32 = arith.constant 0 : i32
    %c0_i32_0 = arith.constant 0 : i32
    return %arg0, %arg1, %c0_i32 : i32, i32, i32
  }
}

</mosaic_0001>

<bundles_post_ra>
// kernel: tpu_custom_call.1
= control target key start
LH: loop header
LB: loop body
LE: loop exit
PB: predicated region body
PF: predicated region fallthrough
CT: control target
= control target key end

     0   :  { %s2992_s0 = inlined_call_operand.hbm [shape: bf16[2,8,32], index: 0, kind: input, shape index: {}]   ;;  %s2993_s1 = inlined_call_operand.hbm [shape: f32[16,32], index: 1, kind: input, shape index: {}]   ;;  %s2994_s2 = inlined_call_operand.hbm [shape: f32[24,32], index: 2, kind: input, shape index: {}]   ;;  %s2995_s3 = inlined_call_operand.hbm [shape: bf16[32,32], index: 3, kind: input, shape index: {}]   ;;  %s2996_s4 = inlined_call_operand.hbm [shape: bf16[32,32], index: 4, kind: input, shape index: {}]   ;;  %s2997_s5 = inlined_call_operand.hbm [shape: bf16[32,32], index: 5, kind: input, shape index: {}]   ;;  %s2998_s6 = inlined_call_operand.hbm [shape: bf16[32,32], index: 6, kind: input, shape index: {}]   ;;  %s2999_s7 = inlined_call_operand.hbm [shape: bf16[32,128], index: 7, kind: input, shape index: {}]   ;;  %s3000_s8 = inlined_call_operand.hbm [shape: bf16[32,32], index: 8, kind: input, shape index: {}]   ;;  %s3001_s9 = inlined_call_operand.hbm [shape: bf16[128,32], index: 9, kind: input, shape index: {}]   ;;  %s3002_s10 = inlined_call_operand.hbm [shape: bf16[2,8,32], index: 10, kind: output, shape index: {}]  }
   0x1   :  { %3014 = sst [smem:[#allocation33_spill]] %s2993_s1 }
   0x2   :  { %3015 = sst [smem:[#allocation34_spill]] %s2994_s2 }
   0x3   :  { %3016 = sst [smem:[#allocation35_spill]] %s3002_s10 }
   0x4   :  { %15 = vsyncpa [#allocation7], 0 }
   0x5   :  { %17 = vsyncpa [#allocation7 + $0x1], 0 }
   0x6   :  { %18 = vsyncpa [#allocation10], 0 }
   0x7   :  { %19 = vsyncpa [#allocation13], 0 }
   0x8   :  { %20 = vsyncpa [#allocation16], 0 }
   0x9   :  { %21 = vsyncpa [#allocation19], 0 }
   0xa   :  { %22 = vsyncpa [#allocation22], 0 }
   0xb   :  { %23 = vsyncpa [#allocation8], 0 }
   0xc   :  { %25 = vsyncpa [#allocation8 + $0x1], 0  ;;  %s2321_s13 = smov 0   ;;  %s2323_s14 = smov 0  }
   0xd   :  { %s2325_s15 = smov 0   ;;  %s2327_s16 = smov 0  }
   0xe   :  { %s2329_s17 = smov 0   ;;  %s2331_s18 = smov 0  }
   0xf LB: > { %3017 = sst [smem:[#allocation31_spill]] %s2239_s16  ;;  %s3003_s19 = sadd.s32 4294967295, %s2247_s18   ;;  %s2247_s18 = sphi %s2331_s18, %s31_s18   ;;  %s2243_s17 = sphi %s2329_s17, %s3047_s17   ;;  %s2239_s16 = sphi %s2327_s16, %s3046_s16   ;;  %s2235_s15 = sphi %s2325_s15, %s3045_s15   ;;  %s2231_s14 = sphi %s2323_s14, %s3044_s14   ;;  %s2227_s13 = sphi %s2321_s13, %s3043_s13  }
  0x10   : > { %p1512_p0 = scmp.ge.s32.totalorder %s2247_s18, 1  ;;  %p2355_p1 = scmp.eq.s32.totalorder %s3003_s19, 0 }
  0x11   : > { %p293_p2 = scmp.lt.s32.totalorder %s2247_s18, 3  ;;  %s2249_s22 = smov [#allocation9]  }
  0x12   : > { %s3018_s20 = scalar_select %p2355_p1, 1, 0 }
  0x13   : > { %p2360_p3 = pnand %p1512_p0, %p293_p2  ;;  %s305_s23 = sshll.u32 %s2249_s22, 4  ;;  %s2364_s23 = int_to_ptr.vmem [resolvable:$true] %s305_s23 }
  0x14   : > { %s2250_s25 = smov [#allocation12]   ;;  %s3022_s1 = sld [smem:[#allocation33_spill]] }
  0x15   : > { %s3019_s21 = scalar_select %p2360_p3, 1, 0 }
  0x16   : > { %p1706_p4 = pneg %p2360_p3  ;;  %s331_s26 = sshll.u32 %s2250_s25, 4  ;;  %s2375_s26 = int_to_ptr.vmem [resolvable:$true] %s331_s26 }
  0x17   : > { %3020 = sst [smem:[#allocation32_spill]] %s3019_s21 }
  0x18   : > { %p2371_p6 = pnand %p1706_p4, %p2355_p1 }
  0x1a   : > { %s1863_s29 = scalar_lea.hbm %s3022_s1, 256  ;;  %p2385_p8 = pneg %p2371_p6 }
  0x1b   : > { %p1864_p7 = scmp.ne.s32.totalorder %s3022_s1, %s1863_s29  ;;  %p1870_p11 = scmp.lt.u32.totalorder %s1863_s29, %s3022_s1 }
  0x1d   : > { %p1866_p9 = pnand %p2385_p8, %p1864_p7 }
  0x1f   : > { %p1867_p10 = pneg %p1866_p9 }
  0x21   : > { %p1872_p12 = pnand %p1870_p11, %p1867_p10 }
  0x23   : > { %1875 = shalt.err (!%p1872_p12)
}
  0x24   : > { %s1876_s27 = scalar_lea.vmem %s2364_s23, 256  ;;  %p1884_p4 = scmp.lt.s32.totalorder %s2364_s23, %s2364_s23 }
  0x25   : > { %p1877_p13 = scmp.ne.s32.totalorder %s2364_s23, %s1876_s27  ;;  %p1885_p5 = scmp.lt.s32.totalorder %s1876_s27, %s1876_s27 }
  0x27   : > { %p1879_p0 = pnand %p1877_p13, %p2385_p8  ;;  %p1886_p7 = por %p1885_p5, %p1884_p4 }
  0x29   : > { %p1880_p2 = pneg %p1879_p0 }
  0x2b   : > { %p1887_p9 = pnand %p1886_p7, %p1880_p2 }
  0x2d   : > { %1890 = shalt.err (!%p1887_p9)
}
  0x2e   : > { %s3006_s28 = smov 128   ;;  %s3007_s29 = smov 8  }
  0x2f   : > { %1709 = dma.hbm_to_vmem [thread:$0]  (!%p2371_p6), %s3022_s1, 256, %s2364_s23, [#allocation10], %s3006_s28, %s3006_s28, %s3007_s29  }
  0x30   : > { %s1891_s27 = scalar_lea.hbm %s2995_s3, 256 }
  0x31   : > { %p1892_p5 = scmp.ne.s32.totalorder %s2995_s3, %s1891_s27  ;;  %p1898_p12 = scmp.lt.u32.totalorder %s1891_s27, %s2995_s3 }
  0x33   : > { %p1894_p10 = pnand %p1892_p5, %p2385_p8 }
  0x35   : > { %p1895_p11 = pneg %p1894_p10 }
  0x37   : > { %p1900_p13 = pnand %p1898_p12, %p1895_p11 }
  0x39   : > { %1903 = shalt.err (!%p1900_p13)
}
  0x3a   : > { %s1904_s23 = scalar_lea.vmem %s2375_s26, 256  ;;  %p1912_p7 = scmp.lt.s32.totalorder %s2375_s26, %s2375_s26 }
  0x3b   : > { %p1905_p0 = scmp.ne.s32.totalorder %s2375_s26, %s1904_s23  ;;  %p1913_p9 = scmp.lt.s32.totalorder %s1904_s23, %s1904_s23 }
  0x3d   : > { %p1907_p2 = pnand %p1905_p0, %p2385_p8  ;;  %p1914_p5 = por %p1913_p9, %p1912_p7 }
  0x3f   : > { %p1908_p4 = pneg %p1907_p2 }
  0x41   : > { %p1915_p10 = pnand %p1914_p5, %p1908_p4 }
  0x43   : > { %1918 = shalt.err (!%p1915_p10)
}
  0x44   : > { %s3011_s10 = smov 64   ;;  %s2254_s16 = smov 4  }
  0x45   : > { %1715 = dma.hbm_to_vmem [thread:$0]  (!%p2371_p6), %s2995_s3, 256, %s2375_s26, [#allocation13], %s3011_s10, %s3011_s10, %s2254_s16  }
  0x46   : > { %s2255_s30 = smov [#allocation15]   ;;  %s2256_s22 = smov [#allocation18]  }
  0x47   : > { %s357_s11 = sshll.u32 %s2255_s30, 4  ;;  %s383_s25 = sshll.u32 %s2256_s22, 4  ;;  %s358_s11 = int_to_ptr.vmem [resolvable:$true] %s357_s11  ;;  %s2435_s25 = int_to_ptr.vmem [resolvable:$true] %s383_s25 }
  0x48   : > { %s1919_s28 = scalar_lea.hbm %s2997_s5, 256 }
  0x49   : > { %p1920_p11 = scmp.ne.s32.totalorder %s2997_s5, %s1919_s28  ;;  %p1926_p0 = scmp.lt.u32.totalorder %s1919_s28, %s2997_s5 }
  0x4b   : > { %p1922_p12 = pnand %p1920_p11, %p2385_p8 }
  0x4d   : > { %p1923_p13 = pneg %p1922_p12 }
  0x4f   : > { %p1928_p2 = pnand %p1926_p0, %p1923_p13 }
  0x51   : > { %1931 = shalt.err (!%p1928_p2)
}
  0x52   : > { %s1932_s21 = scalar_lea.vmem %s358_s11, 256  ;;  %p1940_p5 = scmp.lt.s32.totalorder %s358_s11, %s358_s11 }
  0x53   : > { %p1933_p4 = scmp.ne.s32.totalorder %s358_s11, %s1932_s21  ;;  %p1941_p10 = scmp.lt.s32.totalorder %s1932_s21, %s1932_s21 }
  0x55   : > { %p1935_p7 = pnand %p1933_p4, %p2385_p8  ;;  %p1942_p3 = por %p1941_p10, %p1940_p5 }
  0x57   : > { %p1936_p9 = pneg %p1935_p7 }
  0x59   : > { %p1943_p1 = pnand %p1942_p3, %p1936_p9 }
  0x5b   : > { %1946 = shalt.err (!%p1943_p1)
}
  0x5c   : > { %1721 = dma.hbm_to_vmem [thread:$0]  (!%p2371_p6), %s2997_s5, 256, %s358_s11, [#allocation16], %s3011_s10, %s3011_s10, %s2254_s16  }
  0x5d   : > { %s1947_s22 = scalar_lea.hbm %s2999_s7, 256 }
  0x5e   : > { %p1948_p11 = scmp.ne.s32.totalorder %s2999_s7, %s1947_s22  ;;  %p1954_p12 = scmp.lt.u32.totalorder %s1947_s22, %s2999_s7 }
  0x60   : > { %p1950_p1 = pnand %p1948_p11, %p2385_p8 }
  0x62   : > { %p1951_p3 = pneg %p1950_p1 }
  0x64   : > { %p1956_p13 = pnand %p1954_p12, %p1951_p3 }
  0x66   : > { %1959 = shalt.err (!%p1956_p13)
}
  0x67   : > { %s1960_s11 = scalar_lea.vmem %s2435_s25, 256  ;;  %p1968_p7 = scmp.lt.s32.totalorder %s2435_s25, %s2435_s25 }
  0x68   : > { %p1961_p0 = scmp.ne.s32.totalorder %s2435_s25, %s1960_s11  ;;  %p1969_p9 = scmp.lt.s32.totalorder %s1960_s11, %s1960_s11 }
  0x6a   : > { %p1963_p2 = pnand %p1961_p0, %p2385_p8  ;;  %p1970_p5 = por %p1969_p9, %p1968_p7 }
  0x6c   : > { %p1964_p4 = pneg %p1963_p2 }
  0x6e   : > { %p1971_p10 = pnand %p1970_p5, %p1964_p4 }
  0x70   : > { %1974 = shalt.err (!%p1971_p10)
}
  0x71   : > { %1727 = dma.hbm_to_vmem [thread:$0]  (!%p2371_p6), %s2999_s7, 256, %s2435_s25, [#allocation19], %s3011_s10, %s3011_s10, %s2254_s16  }
  0x72   : > { %s2257_s28 = smov [#allocation11]   ;;  %s2258_s30 = smov [#allocation14]  }
  0x73   : > { %s318_s29 = sshll.u32 %s2257_s28, 4  ;;  %s344_s22 = sshll.u32 %s2258_s30, 4  ;;  %s319_s29 = int_to_ptr.vmem [resolvable:$true] %s318_s29  ;;  %s2484_s22 = int_to_ptr.vmem [resolvable:$true] %s344_s22 }
  0x74   : > { %s3024_s2 = sld [smem:[#allocation34_spill]] }
  0x7a   : > { %s1975_s19 = scalar_lea.hbm %s3024_s2, 384 }
  0x7b   : > { %p1976_p11 = scmp.ne.s32.totalorder %s3024_s2, %s1975_s19  ;;  %p1982_p12 = scmp.lt.u32.totalorder %s1975_s19, %s3024_s2 }
  0x7d   : > { %p1978_p1 = pnand %p1976_p11, %p2385_p8 }
  0x7f   : > { %p1979_p3 = pneg %p1978_p1 }
  0x81   : > { %p1984_p13 = pnand %p1982_p12, %p1979_p3 }
  0x83   : > { %1987 = shalt.err (!%p1984_p13)
}
  0x84   : > { %s1988_s1 = scalar_lea.vmem %s319_s29, 384  ;;  %p1996_p7 = scmp.lt.s32.totalorder %s319_s29, %s319_s29 }
  0x85   : > { %p1989_p0 = scmp.ne.s32.totalorder %s319_s29, %s1988_s1  ;;  %p1997_p9 = scmp.lt.s32.totalorder %s1988_s1, %s1988_s1 }
  0x87   : > { %p1991_p2 = pnand %p1989_p0, %p2385_p8  ;;  %p1998_p5 = por %p1997_p9, %p1996_p7 }
  0x89   : > { %p1992_p4 = pneg %p1991_p2 }
  0x8b   : > { %p1999_p10 = pnand %p1998_p5, %p1992_p4 }
  0x8d   : > { %2002 = shalt.err (!%p1999_p10)
}
  0x8e   : > { %s3025_s28 = smov 8   ;;  %s3026_s30 = smov 128  }
  0x8f   : > { %1712 = dma.hbm_to_vmem [thread:$0]  (!%p2371_p6), %s3024_s2, 384, %s319_s29, [#allocation10], %s3026_s30, %s3026_s30, %s3025_s28  }
  0x90   : > { %s2003_s11 = scalar_lea.hbm %s2996_s4, 256 }
  0x91   : > { %p2004_p11 = scmp.ne.s32.totalorder %s2996_s4, %s2003_s11  ;;  %p2010_p12 = scmp.lt.u32.totalorder %s2003_s11, %s2996_s4 }
  0x93   : > { %p2006_p1 = pnand %p2004_p11, %p2385_p8 }
  0x95   : > { %p2007_p3 = pneg %p2006_p1 }
  0x97   : > { %p2012_p13 = pnand %p2010_p12, %p2007_p3 }
  0x99   : > { %2015 = shalt.err (!%p2012_p13)
}
  0x9a   : > { %s2016_s29 = scalar_lea.vmem %s2484_s22, 256  ;;  %p2024_p7 = scmp.lt.s32.totalorder %s2484_s22, %s2484_s22 }
  0x9b   : > { %p2017_p0 = scmp.ne.s32.totalorder %s2484_s22, %s2016_s29  ;;  %p2025_p9 = scmp.lt.s32.totalorder %s2016_s29, %s2016_s29 }
  0x9d   : > { %p2019_p2 = pnand %p2017_p0, %p2385_p8  ;;  %p2026_p5 = por %p2025_p9, %p2024_p7 }
  0x9f   : > { %p2020_p4 = pneg %p2019_p2 }
  0xa1   : > { %p2027_p10 = pnand %p2026_p5, %p2020_p4 }
  0xa3   : > { %2030 = shalt.err (!%p2027_p10)
}
  0xa4   : > { %s3027_s10 = smov 64   ;;  %s2259_s27 = smov [#allocation17]  }
  0xa5   : > { %1718 = dma.hbm_to_vmem [thread:$0]  (!%p2371_p6), %s2996_s4, 256, %s2484_s22, [#allocation13], %s3027_s10, %s3027_s10, %s2254_s16  }
  0xa6   : > { %s370_s23 = sshll.u32 %s2259_s27, 4  ;;  %s2260_s19 = smov [#allocation20]   ;;  %s371_s23 = int_to_ptr.vmem [resolvable:$true] %s370_s23 }
  0xa7   : > { %s396_s26 = sshll.u32 %s2260_s19, 4  ;;  %s2031_s25 = scalar_lea.hbm %s2998_s6, 256  ;;  %s2533_s26 = int_to_ptr.vmem [resolvable:$true] %s396_s26 }
  0xa8   : > { %p2032_p11 = scmp.ne.s32.totalorder %s2998_s6, %s2031_s25  ;;  %p2038_p12 = scmp.lt.u32.totalorder %s2031_s25, %s2998_s6 }
  0xaa   : > { %p2034_p1 = pnand %p2032_p11, %p2385_p8 }
  0xac   : > { %p2035_p3 = pneg %p2034_p1 }
  0xae   : > { %p2040_p13 = pnand %p2038_p12, %p2035_p3 }
  0xb0   : > { %2043 = shalt.err (!%p2040_p13)
}
  0xb1   : > { %s2044_s30 = scalar_lea.vmem %s371_s23, 256  ;;  %p2052_p7 = scmp.lt.s32.totalorder %s371_s23, %s371_s23 }
  0xb2   : > { %p2045_p0 = scmp.ne.s32.totalorder %s371_s23, %s2044_s30  ;;  %p2053_p9 = scmp.lt.s32.totalorder %s2044_s30, %s2044_s30 }
  0xb4   : > { %p2047_p2 = pnand %p2045_p0, %p2385_p8  ;;  %p2054_p5 = por %p2053_p9, %p2052_p7 }
  0xb6   : > { %p2048_p4 = pneg %p2047_p2 }
  0xb8   : > { %p2055_p10 = pnand %p2054_p5, %p2048_p4 }
  0xba   : > { %2058 = shalt.err (!%p2055_p10)
}
  0xbb   : > { %1724 = dma.hbm_to_vmem [thread:$0]  (!%p2371_p6), %s2998_s6, 256, %s371_s23, [#allocation16], %s3027_s10, %s3027_s10, %s2254_s16  }
  0xbc   : > { %s2059_s25 = scalar_lea.hbm %s3000_s8, 256 }
  0xbd   : > { %p2060_p11 = scmp.ne.s32.totalorder %s3000_s8, %s2059_s25  ;;  %p2066_p12 = scmp.lt.u32.totalorder %s2059_s25, %s3000_s8 }
  0xbf   : > { %p2062_p1 = pnand %p2060_p11, %p2385_p8 }
  0xc1   : > { %p2063_p3 = pneg %p2062_p1 }
  0xc3   : > { %p2068_p13 = pnand %p2066_p12, %p2063_p3 }
  0xc5   : > { %2071 = shalt.err (!%p2068_p13)
}
  0xc6   : > { %s2072_s23 = scalar_lea.vmem %s2533_s26, 256  ;;  %p2080_p7 = scmp.lt.s32.totalorder %s2533_s26, %s2533_s26 }
  0xc7   : > { %p2073_p0 = scmp.ne.s32.totalorder %s2533_s26, %s2072_s23  ;;  %p2081_p9 = scmp.lt.s32.totalorder %s2072_s23, %s2072_s23 }
  0xc9   : > { %p2075_p2 = pnand %p2073_p0, %p2385_p8  ;;  %p2082_p5 = por %p2081_p9, %p2080_p7 }
  0xcb   : > { %p2076_p4 = pneg %p2075_p2 }
  0xcd   : > { %p2083_p10 = pnand %p2082_p5, %p2076_p4 }
  0xcf   : > { %2086 = shalt.err (!%p2083_p10)
}
  0xd0   : > { %1730 = dma.hbm_to_vmem [thread:$0]  (!%p2371_p6), %s3000_s8, 256, %s2533_s26, [#allocation19], %s3027_s10, %s3027_s10, %s2254_s16  }
  0xd1   : > { %s2261_s19 = smov [#allocation21]   ;;  %s2087_s1 = scalar_lea.hbm %s3001_s9, 1024 }
  0xd2   : > { %s409_s11 = sshll.u32 %s2261_s19, 4  ;;  %p2088_p11 = scmp.ne.s32.totalorder %s3001_s9, %s2087_s1  ;;  %s410_s11 = int_to_ptr.vmem [resolvable:$true] %s409_s11 }
  0xd3   : > { %p2094_p12 = scmp.lt.u32.totalorder %s2087_s1, %s3001_s9 }
  0xd4   : > { %p2090_p1 = pnand %p2088_p11, %p2385_p8 }
  0xd6   : > { %p2091_p3 = pneg %p2090_p1 }
  0xd8   : > { %p2096_p13 = pnand %p2094_p12, %p2091_p3 }
  0xda   : > { %2099 = shalt.err (!%p2096_p13)
}
  0xdb   : > { %s2100_s26 = scalar_lea.vmem %s410_s11, 1024  ;;  %p2108_p7 = scmp.lt.s32.totalorder %s410_s11, %s410_s11 }
  0xdc   : > { %p2101_p0 = scmp.ne.s32.totalorder %s410_s11, %s2100_s26  ;;  %p2109_p9 = scmp.lt.s32.totalorder %s2100_s26, %s2100_s26 }
  0xde   : > { %p2103_p2 = pnand %p2101_p0, %p2385_p8  ;;  %p2110_p5 = por %p2109_p9, %p2108_p7 }
  0xe0   : > { %p2104_p4 = pneg %p2103_p2 }
  0xe2   : > { %p2111_p10 = pnand %p2110_p5, %p2104_p4 }
  0xe4   : > { %2114 = shalt.err (!%p2111_p10)
}
  0xe5   : > { %1733 = dma.hbm_to_vmem [thread:$0]  (!%p2371_p6), %s3001_s9, 1024, %s410_s11, [#allocation22], %s3027_s10, %s3027_s10, %s2254_s16  }
  0xe6   : > { %s1511_s24 = sadd.s32 4294967294, %s2247_s18   ;;  %s43_s12 = sadd.s32 1, %s2243_s17 }
  0xe7   : > { %s52_s19 = sadd.s32 1, %s2235_s15  ;;  %p45_p8 = scmp.ge.s32.totalorder %s43_s12, 2 }
  0xe8   : > { %p59_p11 = scmp.ne.s32.totalorder %s2235_s15, %s2231_s14  ;;  %p60_p1 = scmp.eq.s32.totalorder %s2247_s18, 0 }
  0xe9   : > { %p65_p3 = scmp.ne.s32.totalorder %s2231_s14, %s2227_s13  ;;  %s3049_s12 = smov (%p45_p8, %s43_s12), 0 }
  0xea   : > { %p2613_p12 = por %p60_p1, %p59_p11  ;;  %p3029_p13 = scmp.ne.s32.totalorder %s3018_s20, 0 }
  0xeb   : > { %s47_s10 = ssub.s32 %s2243_s17, %s3049_s12  ;;  %s3031_s11 = sadd.s32 4294967295, %s2247_s18  }
  0xec   : > { %p2619_p6 = por %p3029_p13, %p65_p3  ;;  %p280_p0 = scmp.eq.s32.totalorder %s3031_s11, 1 }
  0xed   : > { %p50_p2 = scmp.eq.s32.totalorder %s47_s10, 0  ;;  %p286_p4 = scmp.eq.s32.totalorder %s1511_s24, 1 }
  0xee   : > { %p2627_p7 = por %p280_p0, %p59_p11  ;;  %p1751_p9 = scmp.lt.s32.totalorder %s2247_s18, 2 }
  0xef   : > { %s2633_s1 = scalar_select %p50_p2, %s2235_s15, %s52_s19  }
  0xf0   : > { %s3032_s25 = scalar_select %p2627_p7, 1, 0 }
  0xf1   : > { %p2635_p5 = por %p286_p4, %p65_p3  ;;  %s423_s28 = sand.u32 1, %s2235_s15  }
  0xf2   : > { %s1523_s22 = sshll.u32 %s423_s28, 2  ;;  %s1524_s23 = sshll.u32 %s2243_s17, 6 }
  0xf3   : > { %s3033_s29 = scalar_select %p2635_p5, 1, 0 }
  0xf4   : > { %s2644_s27 = scalar_lea.hbm %s2992_s0, %s1524_s23  ;;  %s427_s24 = scalar_lea.vmem [#allocation6], %s1523_s22 }
  0xf5   : > { %s435_s10 = sshll.u32 %s427_s24, 4  ;;  %p2650_p10 = pnand %p1751_p9, %p2613_p12  ;;  %s2646_s10 = int_to_ptr.vmem [resolvable:$true] %s435_s10 }
  0xf6   : > { %s424_s11 = scalar_lea.sflag [#allocation7], %s423_s28  ;;  %s2115_s2 = scalar_lea.hbm %s2644_s27, 64 }
  0xf7   : > { %p2116_p8 = scmp.ne.s32.totalorder %s2644_s27, %s2115_s2  ;;  %p2117_p11 = pneg %p2650_p10 }
  0xf8   : > { %s2120_s26 = scalar_lea.hbm %s2992_s0, 128  ;;  %p2121_p12 = scmp.lt.u32.totalorder %s2644_s27, %s2992_s0 }
  0xf9   : > { %p2118_p1 = pnand %p2117_p11, %p2116_p8  ;;  %p2122_p13 = scmp.lt.u32.totalorder %s2120_s26, %s2115_s2 }
  0xfa   : > { %p2124_p2 = scmp.lt.u32.totalorder %s2115_s2, %s2644_s27 }
  0xfb   : > { %p2119_p3 = pneg %p2118_p1  ;;  %p2123_p0 = por %p2122_p13, %p2121_p12 }
  0xfd   : > { %p2125_p4 = por %p2124_p2, %p2123_p0 }
  0xff   : > { %p2126_p9 = pnand %p2125_p4, %p2119_p3 }
 0x101   : > { %2129 = shalt.err (!%p2126_p9)
}
 0x102   : > { %s2130_s28 = scalar_lea.vmem %s2646_s10, 64  ;;  %s2262_s24 = smov [#allocation6]  }
 0x103   : > { %p2131_p8 = scmp.ne.s32.totalorder %s2646_s10, %s2130_s28  ;;  %s2135_s22 = sshll.u32 %s2262_s24, 4  ;;  %s2136_s22 = int_to_ptr.vmem [resolvable:$false] %s2135_s22 }
 0x104   : > { %s2137_s23 = scalar_lea.vmem %s2136_s22, 128  ;;  %p2138_p7 = scmp.lt.s32.totalorder %s2646_s10, %s2136_s22 }
 0x105   : > { %p2133_p1 = pnand %p2131_p8, %p2117_p11  ;;  %p2139_p12 = scmp.lt.s32.totalorder %s2137_s23, %s2130_s28 }
 0x107   : > { %p2134_p5 = pneg %p2133_p1  ;;  %p2140_p13 = por %p2139_p12, %p2138_p7 }
 0x109   : > { %p2141_p0 = pnand %p2140_p13, %p2134_p5 }
 0x10b   : > { %2144 = shalt.err (!%p2141_p0)
}
 0x10c   : > { %1737 = dma.hbm_to_vmem [thread:$0]  (!%p2650_p10), %s2644_s27, 64, %s2646_s10, %s424_s11  }
 0x10d   : > { %s3035_s2 = sld [smem:[#allocation32_spill]] }
 0x113   : > { %p3036_p3 = scmp.ne.s32.totalorder %s3035_s2, 0 }
 0x114   : > { %s2682_s26 = sand.u32 (!%p3036_p3), 1, %s2231_s14  }
 0x115   : > { %444 = sbr.rel (%p3036_p3) target bundleno = 2204 (0x89c), region = 60  ;;  %s1526_s21 = sshll.u32 (!%p3036_p3), %s2682_s26, 2 }
 0x116   : > { %s447_s30 = scalar_lea.sflag (!%p3036_p3), [#allocation7], %s2682_s26  ;;  %s450_s28 = scalar_lea.vmem (!%p3036_p3), [#allocation6], %s1526_s21 }
 0x11c   : > { %2198 = dma.done.wait (%p2619_p6), %s447_s30, 64  }
 0x11d   : > { %2200 = vsyncadd (%p2619_p6), %s447_s30, 4294967232  ;;  %p3037_p7 = scmp.ne.s32.totalorder %s3018_s20, 0 }
 0x11f   : > { %2202 = dma.done.wait (%p3037_p7), [#allocation10], 640  }
 0x120   : > { %2204 = vsyncadd (%p3037_p7), [#allocation10], 4294966656 }
 0x121   : > { %2206 = dma.done.wait (%p3037_p7), [#allocation13], 512  }
 0x122   : > { %2208 = vsyncadd (%p3037_p7), [#allocation13], 4294966784 }
 0x123   : > { %2210 = dma.done.wait (%p3037_p7), [#allocation16], 512  }
 0x124   : > { %2212 = vsyncadd (%p3037_p7), [#allocation16], 4294966784 }
 0x125   : > { %2214 = dma.done.wait (%p3037_p7), [#allocation19], 512  }
 0x126   : > { %2216 = vsyncadd (%p3037_p7), [#allocation19], 4294966784 }
 0x127   : > { %2218 = dma.done.wait (%p3037_p7), [#allocation22], 1024  }
 0x128   : > { %2220 = vsyncadd (%p3037_p7), [#allocation22], 4294966272  ;;  %vm537_vm0 = vcmask 261120   ;;  %v535_v0 = vld [vmem:[%s450_s28] sm:$0xf]  ;;  %vm528_vm1 = vcmask 254976   ;;  %v552_v11 = vlaneseq }
 0x129   : > { %v536_v1 = vunpack.c.l.bf16 %v535_v0  ;;  %v2263_v8 = vmov 0.0   ;;  %v2722_v15 = vld [vmem:[#allocation9] sm:$0xff]  ;;  %vm530_vm2 = vcmask 253952   ;;  %v1825_v29 = vld [vmem:[#allocation12] sm:$0xff]   ;;  %vm2264_vm3 = vmmov 0   ;;  %v1826_v30 = vld [vmem:[#allocation12 + $0x8] sm:$0xff]  }
 0x12a   : > { %529 = vst.msk [vmem:[#allocation3] sm:$0x3] %vm528_vm1, %v2263_v8  ;;  %1598 = vmatprep.subr.bf16.mxu0 %v2263_v8  ;;  %1622 = vmatprep.subr.bf16.mxu1 %v2263_v8  ;;  %v2717_v13 = vshrl.u32 %v552_v11, 7  ;;  %v604_v41 = vsub.f32 1.0, %v2722_v15  ;;  %vm597_vm4 = vcmask 261127   ;;  %v2768_v53 = vld [vmem:[#allocation9 + $0x8] sm:$0xff] }
 0x12b   : > { %v538_v2 = vsel %vm537_vm0, %v536_v1, 0.0  ;;  %531 = vst.msk [vmem:[#allocation4] sm:$0x1] %vm530_vm2, %v2263_v8  ;;  %532 = vst.msk [vmem:[#allocation5] sm:$0x1] %vm530_vm2, %v2263_v8  ;;  %1602 = vmatprep.mubr.msk.bf16.mxu0 %vm2264_vm3, %v2263_v8  ;;  %1626 = vmatprep.mubr.msk.bf16.mxu1 %vm2264_vm3, %v2263_v8  ;;  %v1827_v56 = vld [vmem:[#allocation14] sm:$0xff]  }
 0x12c   : > { %539 = vadd.xlane.f32.xlu0 %v538_v2  ;;  %v2720_v14 = vsub.s32 0, %v2717_v13  ;;  %v2725_v16 = vsub.s32 1, %v2717_v13  ;;  %1599 = vmatpush3.bf16.msra.mxu0 %v1825_v29  ;;  %v2748_v34 = vsub.s32 2, %v2717_v13  ;;  %v584_v35 = vsub.s32 3, %v2717_v13  ;;  %v1828_v61 = vld [vmem:[#allocation14 + $0x8] sm:$0xff]   ;;  %s3038_s20 = sld [smem:[#allocation31_spill]] }
 0x12d   : > { %1600 = vmatprep.subr.bf16.mxu0 %v2263_v8  ;;  %v2757_v40 = vsub.s32 6, %v2717_v13  ;;  %vm588_vm5 = vcmp.eq.s32.totalorder %v2717_v13, 0  ;;  %v613_v48 = vsub.s32 7, %v2717_v13  ;;  %v2772_v59 = vsub.f32 1.0, %v2768_v53  ;;  %s522_s27 = scalar_lea.vmem [#allocation23], %s1526_s21  ;;  %s3039_s24 = sld [smem:[#allocation35_spill]] }
 0x12e   : > { %v555_v17 = vrot.slane %v2722_v15, %v2720_v14  ;;  %v560_v20 = vrot.slane %v2722_v15, %v2725_v16  ;;  %v580_v36 = vrot.slane %v2722_v15, %v2748_v34  ;;  %v585_v38 = vrot.slane %v2722_v15, %v584_v35  ;;  %s1344_s10 = sshll.u32 %s522_s27, 4  ;;  %s1330_s23 = scalar_lea.sflag [#allocation8], %s2682_s26  ;;  %s2945_s10 = int_to_ptr.vmem [resolvable:$true] %s1344_s10 }
 0x12f   : > { %v602_v45 = vrot.slane %v2722_v15, %v2757_v40  ;;  %v608_v46 = vrot.slane %v604_v41, %v2757_v40  ;;  %v619_v52 = vrot.slane %v604_v41, %v613_v48  ;;  %v614_v55 = vrot.slane %v2722_v15, %v613_v48  ;;  %s2145_s2 = scalar_lea.vmem %s2945_s10, 64  ;;  %p3040_p5 = scmp.ne.s32.totalorder %s3032_s25, 0 }
 0x130   : > { %1601 = vmatpush3.bf16.msra.mxu0 %v1826_v30  ;;  %v631_v63 = vrot.slane %v2772_v59, %v2720_v14  ;;  %v625_v0 = vrot.slane %v2768_v53, %v2720_v14  ;;  %vm838_vm6 = vcmp.ge.s32.totalorder %v2717_v13, 1  ;;  %vm847_vm7 = vcmp.ge.s32.totalorder %v2717_v13, 2  ;;  %p2146_p6 = scmp.ne.s32.totalorder %s2945_s10, %s2145_s2  ;;  %s2265_s21 = smov [#allocation23]  }
 0x131   : > { %1606 = vmatprep.subr.bf16.mxu0 %v2263_v8  ;;  %v2796_v30 = vld [vmem:[#allocation3] sm:$0x1]  ;;  %vm856_vm8 = vcmp.ge.s32.totalorder %v2717_v13, 3  ;;  %vm865_vm9 = vcmp.ge.s32.totalorder %v2717_v13, 4  ;;  %vm874_vm10 = vcmp.ge.s32.totalorder %v2717_v13, 5  ;;  %vm883_vm11 = vcmp.ge.s32.totalorder %v2717_v13, 6 }
 0x132   : > { %v1537_v43 = vld [vmem:[#allocation4] ss:$0 sm:$0xff]  ;;  %vm892_vm12 = vcmp.ge.s32.totalorder %v2717_v13, 7  ;;  %s1568_s16 = sshll.u32 %s3038_s20, 6  ;;  %vm1327_vm13 = vcmask 257024   ;;  %p2147_p10 = pnand %p2146_p6, %p3040_p5 }
 0x133   : > { %s2943_s22 = scalar_lea.hbm %s3039_s24, %s1568_s16  ;;  %s2149_s30 = sshll.u32 %s2265_s21, 4  ;;  %s2150_s30 = int_to_ptr.vmem [resolvable:$false] %s2149_s30 }
 0x134   : > { %p2148_p11 = pneg %p2147_p10  ;;  %s2151_s28 = scalar_lea.vmem %s2150_s30, 128 }
 0x135   : > { %p2152_p2 = scmp.lt.s32.totalorder %s2945_s10, %s2150_s30  ;;  %p2153_p4 = scmp.lt.s32.totalorder %s2151_s28, %s2145_s2 }
 0x137   : > { %p2154_p9 = por %p2153_p4, %p2152_p2 }
 0x139   : > { %p2155_p8 = pnand %p2154_p9, %p2148_p11 }
 0x1b9   : > { %v540_v3 = vpop.xlane.xlu0 %539 }
 0x1ba   : > { %v542_v4 = vmul.f32 0.03125, %v540_v3 }
 0x1bc   : > { %v543_v5 = vsub.f32 %v536_v1, %v542_v4  ;;  %v1829_v1 = vld [vmem:[#allocation15] sm:$0xff]  }
 0x1be   : > { %v544_v6 = vmul.f32 %v543_v5, %v543_v5 }
 0x1c0   : > { %v545_v7 = vsel %vm537_vm0, %v544_v6, 0.0 }
 0x1c1   : > { %546 = vadd.xlane.f32.xlu0 %v545_v7 }
 0x24e   : > { %v547_v9 = vpop.xlane.xlu0 %546 }
 0x24f   : > { %v548_v10 = vmul.f32 0.03125, %v547_v9  ;;  %v1831_v9 = vld [vmem:[#allocation17] sm:$0xff]  }
 0x250   : > { %1623 = vmatpush3.bf16.msra.mxu1 %v1831_v9  ;;  %v821_v9 = vld [vmem:[#allocation11 + $0x8] sm:$0xff] }
 0x251   : > { %v549_v12 = vadd.f32 1e-05, %v548_v10  ;;  %v1832_v10 = vld [vmem:[#allocation17 + $0x8] sm:$0xff]   ;;  %1624 = vmatprep.subr.bf16.mxu1 %v2263_v8 }
 0x253   : > { %1845 = vrsqrt.f32 %v549_v12 }
 0x254   : > { %1625 = vmatpush3.bf16.msra.mxu1 %v1832_v10 }
 0x255   : > { %1638 = vmatprep.subr.bf16.mxu1 %v2263_v8 }
 0x25d   : > { %v1846_v18 = vpop.eup %1845 }
 0x25e   : > { %v551_v19 = vmul.f32 %v1846_v18, %v543_v5  ;;  %v1830_v5 = vld [vmem:[#allocation15 + $0x8] sm:$0xff]  }
 0x260   : > { %v556_v21 = vmul.f32 %v555_v17, %v551_v19 }
 0x262   : > { %v2731_v22 = vadd.f32 %v560_v20, %v556_v21 }
 0x264   : > { %v564_v23 = vsel %vm537_vm0, %v2731_v22, 0.0 }
 0x265   : > { %565 = vadd.xlane.f32.xlu1 %v564_v23 }
 0x2f2   : > { %v566_v24 = vpop.xlane.xlu1 %565 }
 0x2f3   : > { %v567_v25 = vmul.f32 0.03125, %v566_v24 }
 0x2f5   : > { %v568_v26 = vsub.f32 %v2731_v22, %v567_v25 }
 0x2f7   : > { %v569_v27 = vmul.f32 %v568_v26, %v568_v26 }
 0x2f9   : > { %v570_v28 = vsel %vm537_vm0, %v569_v27, 0.0  ;;  %v2793_v27 = vld [vmem:[#allocation3 + $0x1] sm:$0x1] }
 0x2fa   : > { %571 = vadd.xlane.f32.xlu1 %v570_v28 }
 0x387   : > { %v572_v31 = vpop.xlane.xlu1 %571 }
 0x388   : > { %v573_v32 = vmul.f32 0.03125, %v572_v31 }
 0x38a   : > { %v574_v33 = vadd.f32 1e-05, %v573_v32  ;;  %v921_v32 = vrot.slane %v2793_v27, %v2720_v14 }
 0x38c   : > { %1847 = vrsqrt.f32 %v574_v33 }
 0x396   : > { %v1848_v37 = vpop.eup %1847 }
 0x397   : > { %v576_v39 = vmul.f32 %v1848_v37, %v568_v26  ;;  %v2801_v37 = vld [vmem:[#allocation11 + $0x10] sm:$0xff] }
 0x398   : > { %v828_v41 = vrot.slane %v2801_v37, %v2725_v16 }
 0x399   : > { %v581_v42 = vmul.f32 %v580_v36, %v576_v39  ;;  %v820_v36 = vld [vmem:[#allocation11] sm:$0xff]  ;;  %v834_v39 = vrot.slane %v2796_v30, %v2720_v14 }
 0x39a   : > { %v2818_v48 = vrot.slane %v820_v36, %v2757_v40 }
 0x39b   : > { %v586_v44 = vadd.f32 %v585_v38, %v581_v42  ;;  %v852_v42 = vrot.slane %v820_v36, %v2725_v16 }
 0x39d   : > { %v589_v47 = vrot.slane %v586_v44, 7  ;;  %598 = vst.msk [vmem:[#allocation4 - $0x7] sm:$0x80] %vm597_vm4, %v586_v44  ;;  %v603_v50 = vmul.f32 %v602_v45, %v586_v44  ;;  %v615_v60 = vmul.f32 %v614_v55, %v586_v44  ;;  %v626_v4 = vmul.f32 %v625_v0, %v586_v44 }
 0x39e   : > { %v2809_v44 = vrot.slane %v820_v36, %v2748_v34  ;;  %v2813_v45 = vrot.slane %v820_v36, %v584_v35 }
 0x39f   : > { %v596_v49 = vsel %vm588_vm5, %v1537_v43, %v589_v47  ;;  %v922_v43 = vmul.f32 %v921_v32, %v820_v36  ;;  %v887_v47 = vsub.s32 5, %v2717_v13 }
 0x3a0   : > { %v609_v51 = vmul.f32 %v608_v46, %v596_v49  ;;  %v620_v58 = vmul.f32 %v619_v52, %v596_v49  ;;  %v632_v3 = vmul.f32 %v631_v63, %v596_v49  ;;  %v878_v46 = vsub.s32 4, %v2717_v13 }
 0x3a1   : > { %v835_v49 = vmul.f32 %v834_v39, %v820_v36 }
 0x3a2   : > { %v610_v54 = vadd.f32 %v609_v51, %v603_v50  ;;  %v621_v62 = vadd.f32 %v620_v58, %v615_v60  ;;  %v633_v6 = vadd.f32 %v632_v3, %v626_v4  ;;  %v843_v50 = vrot.slane %v820_v36, %v2720_v14 }
 0x3a3   : > { %v2835_v14 = vrot.slane %v820_v36, %v887_v47 }
 0x3a4   : > { %v634_v57 = vpack.c.bf16 %v610_v54, %v610_v54  ;;  %v694_v2 = vpack.c.bf16 %v621_v62, %v621_v62  ;;  %v754_v7 = vpack.c.bf16 %v633_v6, %v633_v6 }
 0x3a6   : > { %1603 = vmatmul.mubr.msk.bf16.vlgmr.msra.gmra.mrb[0].mxu0 %vm537_vm0, %v634_v57 }
 0x3a7   : > { %1607 = vmatpush3.bf16.msra.mxu0 %v1827_v56  ;;  %1610 = vmatprep.mubr.msk.bf16.mxu0 %vm2264_vm3, %v2263_v8  ;;  %v2830_v56 = vrot.slane %v820_v36, %v878_v46 }
 0x3a8   : > { %1608 = vmatprep.subr.bf16.mxu0 %v2263_v8 }
 0x3ab   : > { %1609 = vmatpush3.bf16.msra.mxu0 %v1828_v61 }
 0x3ac   : > { %1614 = vmatprep.subr.bf16.mxu0 %v2263_v8 }
 0x3ae   : > { %1611 = vmatmul.mubr.msk.bf16.vlgmr.msra.gmra.mrb[4].mxu0 %vm537_vm0, %v694_v2 }
 0x3af   : > { %1615 = vmatpush3.bf16.msra.mxu0 %v1829_v1  ;;  %1618 = vmatprep.mubr.msk.bf16.mxu0 %vm2264_vm3, %v2263_v8 }
 0x3b0   : > { %1616 = vmatprep.subr.bf16.mxu0 %v2263_v8 }
 0x3b3   : > { %1617 = vmatpush3.bf16.msra.mxu0 %v1830_v5 }
 0x3b4   : > { %1630 = vmatprep.subr.bf16.mxu0 %v2263_v8 }
 0x3b6   : > { %1619 = vmatmul.mubr.msk.bf16.vlgmr.msra.gmra.mrb[8].mxu0 %vm537_vm0, %v754_v7 }
 0x3b7   : > { %1634 = vmatprep.mubr.msk.bf16.mxu0 %vm2264_vm3, %v2263_v8 }
 0x479   : > { %v688_v11 = vpop.f32.mrb[0].mxu0 }
 0x47a   : > { %v814_v12 = vmin.f32 %v688_v11, 60.0  ;;  %v1604_v17 = vpop.f32.mrb[1].mxu0 }
 0x47b   : > { %v691_v18 = vpop.f32.mrb[2].mxu0 }
 0x47c   : > { %v815_v19 = vmul.f32 1.442695, %v814_v12  ;;  %v1605_v20 = vpop.f32.mrb[3].mxu0 }
 0x47e   : > { %1849 = vpow2.f32 %v815_v19 }
 0x481   : > { %v748_v21 = vpop.f32.mrb[4].mxu0 }
 0x482   : > { %v1612_v23 = vpop.f32.mrb[5].mxu0 }
 0x483   : > { %v751_v24 = vpop.f32.mrb[6].mxu0 }
 0x484   : > { %v1613_v25 = vpop.f32.mrb[7].mxu0 }
 0x488   : > { %v1850_v26 = vpop.eup %1849 }
 0x489   : > { %819 = vst.msk [vmem:[#allocation2 + $0x8] sm:$0xff] %vm537_vm0, %v1850_v26  ;;  %v817_v28 = vmul.f32 %v1850_v26, %v748_v21  ;;  %v808_v29 = vpop.f32.mrb[8].mxu0 }
 0x48a   : > { %v1620_v31 = vpop.f32.mrb[9].mxu0  ;;  %v1547_v3 = vmul.f32 -1.442695, %v808_v29 }
 0x48b   : > { %818 = vst.msk [vmem:[#allocation2] sm:$0xff] %vm537_vm0, %v817_v28  ;;  %v811_v33 = vpop.f32.mrb[10].mxu0 }
 0x48c   : > { %v1621_v38 = vpop.f32.mrb[11].mxu0  ;;  %1851 = vpow2.f32 %v1547_v3  ;;  %v952_v3 = vmul.f32 %v2793_v27, %v2801_v37 }
 0x490   : > { %v2822_v51 = vld [vmem:[#allocation2 + $0x8] sm:$0xff] }
 0x491   : > { %v916_v57 = vmul.f32 %v2822_v51, %v828_v41  ;;  %v924_v58 = vrot.slane %v2822_v51, 7  ;;  %v928_v1 = vrot.slane %v2822_v51, 6  ;;  %v932_v2 = vrot.slane %v2822_v51, 5 }
 0x492   : > { %v823_v52 = vld [vmem:[#allocation2] sm:$0xff]  ;;  %v936_v6 = vrot.slane %v2822_v51, 4  ;;  %v940_v7 = vrot.slane %v2822_v51, 3  ;;  %v944_v32 = vrot.slane %v2822_v51, 2 }
 0x493   : > { %v829_v35 = vmul.f32 %v828_v41, %v823_v52  ;;  %v837_v54 = vrot.slane %v823_v52, 7  ;;  %v846_v40 = vrot.slane %v823_v52, 6  ;;  %v855_v55 = vrot.slane %v823_v52, 5 }
 0x494   : > { %v864_v63 = vrot.slane %v823_v52, 4  ;;  %v873_v5 = vrot.slane %v823_v52, 3  ;;  %v882_v12 = vrot.slane %v823_v52, 2  ;;  %v891_v17 = vrot.slane %v823_v52, 1 }
 0x495   : > { %v836_v60 = vadd.f32 %v835_v49, %v829_v35  ;;  %v839_v61 = vsel %vm838_vm6, %v837_v54, 0.0  ;;  %v848_v62 = vsel %vm847_vm7, %v846_v40, 0.0  ;;  %v857_v4 = vsel %vm856_vm8, %v855_v55, 0.0 }
 0x496   : > { %v844_v0 = vmul.f32 %v843_v50, %v839_v61  ;;  %v853_v11 = vmul.f32 %v852_v42, %v848_v62  ;;  %v866_v18 = vsel %vm865_vm9, %v864_v63, 0.0  ;;  %v901_v19 = vmul.f32 %v823_v52, %v821_v9 }
 0x497   : > { %v917_v20 = vadd.f32 1e-09, %v916_v57  ;;  %v925_v21 = vsel %vm838_vm6, %v924_v58, 0.0  ;;  %v862_v24 = vmul.f32 %v2809_v44, %v857_v4  ;;  %v929_v26 = vsel %vm847_vm7, %v928_v1, 0.0 }
 0x498   : > { %v845_v10 = vadd.f32 %v844_v0, %v836_v60  ;;  %v926_v25 = vmul.f32 %v925_v21, %v843_v50  ;;  %v875_v28 = vsel %vm874_vm10, %v873_v5, 0.0  ;;  %v902_v29 = vsel %vm537_vm0, %v901_v19, 0.0 }
 0x499   : > { %v923_v31 = vadd.f32 %v922_v43, %v917_v20  ;;  %v871_v36 = vmul.f32 %v2813_v45, %v866_v18  ;;  %v903_v38 = vrot.slane %v902_v29, 4  ;;  %v933_v39 = vsel %vm856_vm8, %v932_v2, 0.0 }
 0x49a   : > { %v854_v23 = vadd.f32 %v853_v11, %v845_v10  ;;  %v884_v41 = vsel %vm883_vm11, %v882_v12, 0.0  ;;  %v893_v49 = vsel %vm892_vm12, %v891_v17, 0.0  ;;  %v930_v52 = vmul.f32 %v929_v26, %v852_v42 }
 0x49b   : > { %v927_v50 = vadd.f32 %v926_v25, %v923_v31  ;;  %v880_v43 = vmul.f32 %v2830_v56, %v875_v28  ;;  %v904_v54 = vadd.f32 %v903_v38, %v902_v29  ;;  %v937_v40 = vsel %vm865_vm9, %v936_v6, 0.0 }
 0x49c   : > { %v863_v33 = vadd.f32 %v862_v24, %v854_v23  ;;  %v934_v57 = vmul.f32 %v933_v39, %v2809_v44  ;;  %v948_v58 = vrot.slane %v2822_v51, 1  ;;  %v953_v60 = vmul.f32 %v2822_v51, %v821_v9 }
 0x49d   : > { %v931_v55 = vadd.f32 %v930_v52, %v927_v50  ;;  %v889_v62 = vmul.f32 %v2835_v14, %v884_v41  ;;  %v905_v63 = vrot.slane %v904_v54, 2  ;;  %v941_v42 = vsel %vm874_vm10, %v940_v7, 0.0 }
 0x49e   : > { %v872_v35 = vadd.f32 %v871_v36, %v863_v33  ;;  %v898_v0 = vmul.f32 %v2818_v48, %v893_v49  ;;  %v938_v2 = vmul.f32 %v937_v40, %v2813_v45  ;;  %v954_v4 = vsel %vm537_vm0, %v953_v60, 0.0  ;;  %v1834_v60 = vld [vmem:[#allocation18 + $0x8] sm:$0xff]  }
 0x49f   : > { %v935_v1 = vadd.f32 %v934_v57, %v931_v55  ;;  %v906_v44 = vadd.f32 %v905_v63, %v904_v54  ;;  %v945_v6 = vsel %vm883_vm11, %v944_v32, 0.0  ;;  %v955_v51 = vrot.slane %v954_v4, 4  ;;  %v1840_v63 = vld [vmem:[#allocation21 + $0x18] sm:$0xff]  }
 0x4a0   : > { %v881_v61 = vadd.f32 %v880_v43, %v872_v35  ;;  %v900_v9 = vmul.f32 %v2796_v30, %v2801_v37  ;;  %v942_v11 = vmul.f32 %v941_v42, %v2830_v56  ;;  %v949_v45 = vsel %vm892_vm12, %v948_v58, 0.0  ;;  %v1833_v58 = vld [vmem:[#allocation18] sm:$0xff]  }
 0x4a1   : > { %v939_v10 = vadd.f32 %v938_v2, %v935_v1  ;;  %v907_v12 = vrot.slane %v906_v44, 1  ;;  %v956_v17 = vadd.f32 %v955_v51, %v954_v4  ;;  %v946_v19 = vmul.f32 %v945_v6, %v2835_v14  ;;  %v1852_v14 = vpop.eup %1851  ;;  %1631 = vmatpush3.bf16.msra.mxu0 %v1833_v58  ;;  %v1841_v42 = vld [vmem:[#allocation21 + $0x20] sm:$0xff]  }
 0x4a2   : > { %v890_v5 = vadd.f32 %v889_v62, %v881_v61  ;;  %v950_v30 = vmul.f32 %v949_v45, %v2818_v48  ;;  %v967_v31 = vadd.f32 1.0, %v1852_v14  ;;  %1632 = vmatprep.subr.bf16.mxu0 %v2263_v8  ;;  %v1838_v61 = vld [vmem:[#allocation21 + $0x8] sm:$0xff]   ;;  %v1839_v62 = vld [vmem:[#allocation21 + $0x10] sm:$0xff]   ;;  %v1057_v6 = vrot.slane %v2722_v15, %v887_v47 }
 0x4a3   : > { %v943_v18 = vadd.f32 %v942_v11, %v939_v10  ;;  %v908_v20 = vadd.f32 %v907_v12, %v906_v44  ;;  %v957_v21 = vrot.slane %v956_v17, 2  ;;  %v1551_v10 = vld [vmem:[#allocation5] ss:$0 sm:$0xff]  ;;  %v1077_v12 = vrot.slane %v2772_v59, %v2725_v16 }
 0x4a4   : > { %v899_v7 = vadd.f32 %v898_v0, %v890_v5  ;;  %v1842_v0 = vld [vmem:[#allocation21 + $0x28] sm:$0xff]   ;;  %v1052_v5 = vrot.slane %v2722_v15, %v878_v46  ;;  %v1088_v15 = vrot.slane %v2772_v59, %v2748_v34 }
 0x4a5   : > { %v947_v23 = vadd.f32 %v946_v19, %v943_v18  ;;  %v909_v24 = vadd.f32 %v908_v20, %v900_v9  ;;  %v958_v25 = vadd.f32 %v957_v21, %v956_v17  ;;  %1633 = vmatpush3.bf16.msra.mxu0 %v1834_v60  ;;  %v1083_v19 = vrot.slane %v2768_v53, %v2748_v34  ;;  %v1835_v20 = vld [vmem:[#allocation20] sm:$0xff]   ;;  %v1844_v34 = vld [vmem:[#allocation21 + $0x38] sm:$0xff]  }
 0x4a6   : > { %912 = vst.msk [vmem:[#allocation2] sm:$0xff] %vm537_vm0, %v899_v7  ;;  %1658 = vmatprep.subr.bf16.mxu0 %v2263_v8  ;;  %v1072_v7 = vrot.slane %v2768_v53, %v2725_v16 }
 0x4a7   : > { %v951_v56 = vadd.f32 %v950_v30, %v947_v23  ;;  %911 = vst.msk [vmem:[#allocation3] sm:$0x1] %vm530_vm2, %v909_v24  ;;  %v959_v26 = vrot.slane %v958_v25, 1  ;;  %v1836_v30 = vld [vmem:[#allocation20 + $0x8] sm:$0xff]   ;;  %v1843_v24 = vld [vmem:[#allocation21 + $0x30] sm:$0xff]  }
 0x4a9   : > { %963 = vst.msk [vmem:[#allocation2 + $0x8] sm:$0xff] %vm537_vm0, %v951_v56  ;;  %v960_v28 = vadd.f32 %v959_v26, %v958_v25 }
 0x4ab   : > { %v961_v29 = vadd.f32 %v960_v28, %v952_v3 }
 0x4ad   : > { %962 = vst.msk [vmem:[#allocation3 + $0x1] sm:$0x1] %vm530_vm2, %v961_v29  ;;  %v970_v33 = vld [vmem:[#allocation2] sm:$0xff] }
 0x4b0   : > { %v971_v32 = vld [vmem:[#allocation2 + $0x8] sm:$0xff] }
 0x4b1   : > { %1853 = vrcp.f32 %v971_v32 }
 0x4b2   : > { %1855 = vrcp.f32 %v967_v31 }
 0x4bb   : > { %v1854_v48 = vpop.eup %1853 }
 0x4bc   : > { %v973_v36 = vmul.f32 %v1854_v48, %v970_v33  ;;  %v1856_v38 = vpop.eup %1855 }
 0x4be   : > { %v974_v39 = vmul.f32 %v1856_v38, %v973_v36 }
 0x4c0   : > { %v975_v27 = vpack.c.bf16 %v974_v39, %v974_v39 }
 0x4c2   : > { %1627 = vmatmul.mubr.msk.bf16.vlgmr.msra.gmra.mrb[0].mxu1 %vm537_vm0, %v975_v27 }
 0x4c3   : > { %1654 = vmatprep.mubr.msk.bf16.mxu1 %vm2264_vm3, %v2263_v8 }
 0x595   : > { %v1029_v37 = vpop.f32.mrb[0].mxu1 }
 0x596   : > { %v2899_v41 = vadd.f32 %v1029_v37, %v2731_v22  ;;  %v1628_v49 = vpop.f32.mrb[1].mxu1  ;;  %v1837_v22 = vld [vmem:[#allocation21] sm:$0xff]  }
 0x597   : > { %v1032_v50 = vpop.f32.mrb[2].mxu1  ;;  %1639 = vmatpush3.bf16.msra.mxu1 %v1837_v22 }
 0x598   : > { %v1629_v52 = vpop.f32.mrb[3].mxu1  ;;  %v1036_v35 = vsel %vm537_vm0, %v2899_v41, 0.0  ;;  %1640 = vmatprep.subr.bf16.mxu1 %v2263_v8 }
 0x599   : > { %1037 = vadd.xlane.f32.xlu0 %v1036_v35 }
 0x59b   : > { %1641 = vmatpush3.bf16.msra.mxu1 %v1838_v61 }
 0x59c   : > { %1642 = vmatprep.subr.bf16.mxu1 %v2263_v8 }
 0x59f   : > { %1643 = vmatpush3.bf16.msra.mxu1 %v1839_v62 }
 0x5a0   : > { %1644 = vmatprep.subr.bf16.mxu1 %v2263_v8 }
 0x5a3   : > { %1645 = vmatpush3.bf16.msra.mxu1 %v1840_v63 }
 0x5a4   : > { %1646 = vmatprep.subr.bf16.mxu1 %v2263_v8 }
 0x5a7   : > { %1647 = vmatpush3.bf16.msra.mxu1 %v1841_v42 }
 0x5a8   : > { %1648 = vmatprep.subr.bf16.mxu1 %v2263_v8 }
 0x5ab   : > { %1649 = vmatpush3.bf16.msra.mxu1 %v1842_v0 }
 0x5ac   : > { %1650 = vmatprep.subr.bf16.mxu1 %v2263_v8 }
 0x5af   : > { %1651 = vmatpush3.bf16.msra.mxu1 %v1843_v24 }
 0x5b0   : > { %1652 = vmatprep.subr.bf16.mxu1 %v2263_v8 }
 0x5b3   : > { %1653 = vmatpush3.bf16.msra.mxu1 %v1844_v34 }
 0x626   : > { %v1038_v43 = vpop.xlane.xlu0 %1037 }
 0x627   : > { %v1039_v54 = vmul.f32 0.03125, %v1038_v43 }
 0x629   : > { %v1040_v40 = vsub.f32 %v2899_v41, %v1039_v54 }
 0x62b   : > { %v1041_v55 = vmul.f32 %v1040_v40, %v1040_v40 }
 0x62d   : > { %v1042_v57 = vsel %vm537_vm0, %v1041_v55, 0.0 }
 0x62e   : > { %1043 = vadd.xlane.f32.xlu1 %v1042_v57 }
 0x6bb   : > { %v1044_v1 = vpop.xlane.xlu1 %1043 }
 0x6bc   : > { %v1045_v2 = vmul.f32 0.03125, %v1044_v1 }
 0x6be   : > { %v1046_v4 = vadd.f32 1e-05, %v1045_v2 }
 0x6c0   : > { %1857 = vrsqrt.f32 %v1046_v4 }
 0x6ca   : > { %v1858_v44 = vpop.eup %1857 }
 0x6cb   : > { %v1048_v51 = vmul.f32 %v1858_v44, %v1040_v40 }
 0x6cd   : > { %v1053_v9 = vmul.f32 %v1052_v5, %v1048_v51 }
 0x6cf   : > { %v1058_v11 = vadd.f32 %v1057_v6, %v1053_v9 }
 0x6d1   : > { %v1060_v45 = vrot.slane %v1058_v11, 7  ;;  %1068 = vst.msk [vmem:[#allocation5 - $0x7] sm:$0x80] %vm597_vm4, %v1058_v11  ;;  %v1073_v17 = vmul.f32 %v1072_v7, %v1058_v11  ;;  %v1084_v16 = vmul.f32 %v1083_v19, %v1058_v11 }
 0x6d3   : > { %v1067_v46 = vsel %vm588_vm5, %v1551_v10, %v1060_v45 }
 0x6d4   : > { %v1078_v18 = vmul.f32 %v1077_v12, %v1067_v46  ;;  %v1089_v23 = vmul.f32 %v1088_v15, %v1067_v46 }
 0x6d6   : > { %v1079_v47 = vadd.f32 %v1078_v18, %v1073_v17  ;;  %v1090_v13 = vadd.f32 %v1089_v23, %v1084_v16 }
 0x6d8   : > { %v1091_v21 = vpack.c.bf16 %v1079_v47, %v1079_v47  ;;  %v1258_v59 = vpack.c.bf16 %v1090_v13, %v1090_v13 }
 0x6da   : > { %1635 = vmatmul.mubr.msk.bf16.vlgmr.msra.gmra.mrb[12].mxu0 %vm537_vm0, %v1091_v21 }
 0x6db   : > { %1659 = vmatpush3.bf16.msra.mxu0 %v1835_v20  ;;  %1662 = vmatprep.mubr.msk.bf16.mxu0 %vm2264_vm3, %v2263_v8 }
 0x6dc   : > { %1660 = vmatprep.subr.bf16.mxu0 %v2263_v8 }
 0x6df   : > { %1661 = vmatpush3.bf16.msra.mxu0 %v1836_v30 }
 0x6e2   : > { %1663 = vmatmul.mubr.msk.bf16.vlgmr.msra.gmra.mrb[16].mxu0 %vm537_vm0, %v1258_v59 }
 0x7ad   : > { %v1145_v53 = vpop.f32.mrb[12].mxu0 }
 0x7ae   : > { %v1151_v25 = vmax.f32 %v1145_v53, 0.0  ;;  %v1636_v56 = vpop.f32.mrb[13].mxu0 }
 0x7af   : > { %v1148_v3 = vpop.f32.mrb[14].mxu0 }
 0x7b0   : > { %v1152_v26 = vmul.f32 %v1151_v25, %v1151_v25  ;;  %v1637_v28 = vpop.f32.mrb[15].mxu0 }
 0x7b2   : > { %v1153_v14 = vpack.c.bf16 %v1152_v26, %v1152_v26 }
 0x7b4   : > { %1655 = vmatmul.mubr.bf16.vlgmr.msra.gmra.mrb[4].mxu1 %v1153_v14 }
 0x7b5   : > { %v1312_v29 = vpop.f32.mrb[16].mxu0 }
 0x7b6   : > { %v1664_v31 = vpop.f32.mrb[17].mxu0  ;;  %v1566_v33 = vmul.f32 -1.442695, %v1312_v29 }
 0x7b7   : > { %v1315_v32 = vpop.f32.mrb[18].mxu0 }
 0x7b8   : > { %v1665_v48 = vpop.f32.mrb[19].mxu0  ;;  %1859 = vpow2.f32 %v1566_v33 }
 0x7c2   : > { %v1860_v36 = vpop.eup %1859 }
 0x7c3   : > { %v1321_v38 = vadd.f32 1.0, %v1860_v36 }
 0x7c5   : > { %1861 = vrcp.f32 %v1321_v38 }
 0x7cf   : > { %v1862_v8 = vpop.eup %1861 }
 0x887   : > { %v1252_v39 = vpop.f32.mrb[4].mxu1 }
 0x888   : > { %v1324_v27 = vmul.f32 %v1862_v8, %v1252_v39  ;;  %v1656_v37 = vpop.f32.mrb[5].mxu1 }
 0x889   : > { %v1255_v49 = vpop.f32.mrb[6].mxu1 }
 0x88a   : > { %v1325_v50 = vadd.f32 %v1324_v27, %v2899_v41  ;;  %v1657_v52 = vpop.f32.mrb[7].mxu1 }
 0x88c   : > { %v1326_v35 = vpack.c.bf16 %v1325_v50, %v1325_v50 }
 0x88e   : > { %1328 = vst.msk [vmem:[%s522_s27] sm:$0xf] %vm1327_vm13, %v1326_v35 }
 0x88f   : > { %2158 = shalt.err (!%p2155_p8)
}
 0x890   : > { %s2159_s26 = scalar_lea.hbm %s2943_s22, 64  ;;  %s2163_s27 = scalar_lea.hbm %s3039_s24, 128 }
 0x891   : > { %p2160_p1 = scmp.ne.s32.totalorder %s2943_s22, %s2159_s26  ;;  %p2164_p0 = scmp.lt.u32.totalorder %s2943_s22, %s3039_s24 }
 0x892   : > { %p2165_p3 = scmp.lt.u32.totalorder %s2163_s27, %s2159_s26  ;;  %p2167_p6 = scmp.lt.u32.totalorder %s2159_s26, %s2943_s22 }
 0x893   : > { %p2161_p12 = pnand %p2160_p1, %p3040_p5 }
 0x894   : > { %p2166_p7 = por %p2165_p3, %p2164_p0 }
 0x895   : > { %p2162_p13 = pneg %p2161_p12 }
 0x896   : > { %p2168_p10 = por %p2167_p6, %p2166_p7 }
 0x898   : > { %p2169_p11 = pnand %p2168_p10, %p2162_p13 }
 0x89a   : > { %2172 = shalt.err (!%p2169_p11)
}
 0x89b   : > { %1704 = dma.vmem_to_hbm [thread:$0]  (%p3040_p5), %s2945_s10, 64, %s2943_s22, %s1330_s23  }
 0x89c PF: > { %s1356_s2 = sand.u32 1, %s2227_s13   ;;  %p3041_p2 = scmp.ne.s32.totalorder %s3033_s29, 0 }
 0x89d   : > { %p3042_p4 = scmp.ge.s32.totalorder %s2247_s18, 2  ;;  %s1357_s21 = scalar_lea.sflag [#allocation8], %s1356_s2 }
 0x89f   : > { %p1739_p9 = pnand %p3042_p4, %p3041_p2 }
 0x8a1   : > { %2222 = dma.done.wait (!%p1739_p9), %s1357_s21, 64  }
 0x8a2   : > { %2224 = vsyncadd (!%p1739_p9), %s1357_s21, 4294967232  ;;  %s31_s18 = sadd.s32 1, %s2247_s18   ;;  %s3043_s13 = smov %s2231_s14 }
 0x8a3   : > { %p28_p8 = scmp.ge.s32.totalorder %s31_s18, 4   ;;  %s3044_s14 = smov %s2235_s15 }
 0x8a4   : > { %s3045_s15 = smov %s2633_s1  ;;  %s3046_s16 = smov %s2243_s17 }
 0x8a5   : > { %s3047_s17 = smov %s3049_s12  ;;  %30 = sbr.rel (!%p28_p8) target bundleno = 15 (0xf), region = 146 }
 0x8ac   :  { %1362 = vsyncpa [#allocation7], 1 }
 0x8ad   :  { %1364 = vsyncpa [#allocation7 + $0x1], 1 }
 0x8ae   :  { %1365 = vsyncpa [#allocation10], 1 }
 0x8af   :  { %1366 = vsyncpa [#allocation13], 1 }
 0x8b0   :  { %1367 = vsyncpa [#allocation16], 1 }
 0x8b1   :  { %1368 = vsyncpa [#allocation19], 1 }
 0x8b2   :  { %1369 = vsyncpa [#allocation22], 1 }
 0x8b3   :  { %1370 = vsyncpa [#allocation8], 1 }
 0x8b4   :  { %1372 = vsyncpa [#allocation8 + $0x1], 1 }

</bundles_post_ra>
